<compile_context>
chip_gen: v7x
topology: tpu7x:2x2x1
jax: 0.10.0
libtpu: 0.0.40
codegen_flags: <defaults>
</compile_context>

<pallas_src>
import functools

import jax
import jax.numpy as jnp
from jax import lax
from jax.experimental import pallas as pl
from jax.experimental.pallas import tpu as pltpu


def _round_up(n, m):
    return ((n + m - 1) // m) * m


def _pad_axis(a, axis, target):
    pad = target - a.shape[axis]
    if pad == 0:
        return a
    widths = [(0, 0)] * a.ndim
    widths[axis] = (0, pad)
    return jnp.pad(a, widths)


def _gru_recurrent_kernel(gi_ref, whh_ref, bhn_ref, h0_ref, out_ref, h_scratch,
                          *, hidden_pad, chunk):
    """Grid = (batch_tiles [parallel], time_chunks [arbitrary]).

    Each grid step processes `chunk` time steps for one batch tile. The hidden
    state lives in a VMEM scratch that persists across time chunks.
    """
    c = pl.program_id(1)      # time-chunk index (innermost, sequential)
    Hp = hidden_pad

    @pl.when(c == 0)
    def _():
        h_scratch[...] = h0_ref[...].astype(jnp.float32)

    h = h_scratch[...]                      # (TB, Hp) f32
    whh = whh_ref[...]                      # (Hp, 3Hp)
    b_hn = bhn_ref[...]                     # (1, Hp)  f32

    def step(i, h_prev):
        # gi already contains b_ih (all gates) + b_hh for the r,z gates.
        gi = gi_ref[i]                      # (TB, 3Hp) f32
        gh = jnp.dot(h_prev.astype(whh.dtype), whh,
                     preferred_element_type=jnp.float32)   # (TB, 3Hp) f32

        r = jax.nn.sigmoid(gi[:, :Hp] + gh[:, :Hp])
        z = jax.nn.sigmoid(gi[:, Hp:2 * Hp] + gh[:, Hp:2 * Hp])
        n = jnp.tanh(gi[:, 2 * Hp:] + r * (gh[:, 2 * Hp:] + b_hn))
        h_new = (1.0 - z) * n + z * h_prev  # keep gate math in f32 (v5e: no bf16 VPU/EUP)

        out_ref[i] = h_new.astype(out_ref.dtype)
        return h_new

    h = lax.fori_loop(0, chunk, step, h, unroll=True)
    h_scratch[...] = h


def gru_layer_forward(x, params, hx=None, *, time_chunk=8,
                      matmul_dtype=jnp.float32):
    """x: (batch, seq, input) float32. Returns (output (B,T,H), local_loss)."""
    B, T, I = x.shape
    w_ih, w_hh, b_ih, b_hh = (params["w_ih"], params["w_hh"],
                              params["b_ih"], params["b_hh"])
    H = w_hh.shape[1]

    # ---- padded sizes: lane-dense hidden dim, sublane-aligned batch ----
    Hp = _round_up(H, 128)
    Bp = _round_up(B, 8)
    TC = max(1, min(time_chunk, T))
    Tp = _round_up(T, TC)

    # ---- per-gate padding of the parameters (keeps gate slices on 128-lane
    #      boundaries inside the kernel) ----
    w_ih_p = _pad_axis(w_ih.reshape(3, H, I), 1, Hp).reshape(3 * Hp, I)
    w_hh_p = _pad_axis(_pad_axis(w_hh.reshape(3, H, H), 1, Hp), 2, Hp)
    w_hh_p = w_hh_p.reshape(3 * Hp, Hp)
    b_ih_p = _pad_axis(b_ih.reshape(3, H), 1, Hp).reshape(3 * Hp)
    b_hh_p = _pad_axis(b_hh.reshape(3, H), 1, Hp)                 # (3, Hp)

    # Fold b_hh for the r,z gates into the hoisted input projection; only b_hn
    # must stay inside the recurrence (it is gated by r).
    b_hh_rz = b_hh_p.at[2].set(0.0).reshape(3 * Hp)
    bias_gi = (b_ih_p + b_hh_rz).astype(jnp.float32)              # (3Hp,)
    b_hn = b_hh_p[2].reshape(1, Hp).astype(jnp.float32)           # (1, Hp)

    # ---- hoisted input projection: one big MXU matmul, output in (T,B,3Hp)
    #      layout so no separate HBM transpose pass is needed ----
    wih_t = jnp.transpose(w_ih_p).astype(matmul_dtype)            # (I, 3Hp)
    gi_all = jnp.einsum("bti,ik->tbk", x.astype(matmul_dtype), wih_t,
                        preferred_element_type=jnp.float32) + bias_gi
    gi_all = _pad_axis(_pad_axis(gi_all, 0, Tp), 1, Bp)           # (Tp, Bp, 3Hp)

    whh_t = jnp.transpose(w_hh_p).astype(matmul_dtype)            # (Hp, 3Hp)

    # ---- initial hidden state (PyTorch convention: hx is (1, B, H)) ----
    if hx is not None:
        h0 = hx[0] if hx.ndim == 3 else hx
        if h0.shape[0] != B:          # module falls back to zeros on batch mismatch
            h0 = jnp.zeros((B, H), jnp.float32)
    else:
        h0 = jnp.zeros((B, H), jnp.float32)
    h0_p = _pad_axis(_pad_axis(h0.astype(jnp.float32), 0, Bp), 1, Hp)  # (Bp, Hp)

    # ---- grid: batch tiles (parallel, megacore) x time chunks (sequential) ----
    num_b_tiles = 2 if (Bp >= 16 and Bp % 16 == 0) else 1
    TB = Bp // num_b_tiles
    num_chunks = Tp // TC

    # Explicit VMEM budget (important on v7x: 64 MiB physical, 32 MiB default).
    wbytes = jnp.dtype(matmul_dtype).itemsize
    footprint = (2 * TC * TB * 3 * Hp * 4      # gi blocks, double-buffered
                 + 2 * TC * TB * Hp * 4        # out blocks, double-buffered
                 + 2 * Hp * 3 * Hp * wbytes    # recurrent weights
                 + 2 * TB * Hp * 4 + 2 * Hp * 4
                 + TB * Hp * 4)                # h scratch
    vmem_limit = int(min(64 * 2**20, max(32 * 2**20, 2 * footprint)))

    kernel = functools.partial(_gru_recurrent_kernel, hidden_pad=Hp, chunk=TC)

    out_pad = pl.pallas_call(
        kernel,
        out_shape=jax.ShapeDtypeStruct((Tp, Bp, Hp), jnp.float32),
        grid_spec=pltpu.PrefetchScalarGridSpec(
            num_scalar_prefetch=0,
            grid=(num_b_tiles, num_chunks),
            in_specs=[
                pl.BlockSpec((TC, TB, 3 * Hp), lambda b, c: (c, b, 0)),  # gi chunk
                pl.BlockSpec((Hp, 3 * Hp), lambda b, c: (0, 0)),         # W_hh^T
                pl.BlockSpec((1, Hp), lambda b, c: (0, 0)),              # b_hn
                pl.BlockSpec((TB, Hp), lambda b, c: (b, 0)),             # h0
            ],
            out_specs=pl.BlockSpec((TC, TB, Hp), lambda b, c: (c, b, 0)),
            scratch_shapes=[pltpu.VMEM((TB, Hp), jnp.float32)],
        ),
        compiler_params=pltpu.CompilerParams(
            dimension_semantics=("parallel", "arbitrary"),
            vmem_limit_bytes=vmem_limit),
    )(gi_all, whh_t, b_hn, h0_p)

    # Strip padding BEFORE any reduction, then back to batch_first layout.
    out_tbh = out_pad[:T, :B, :H]
    output = jnp.transpose(out_tbh, (1, 0, 2))                    # (B, T, H)

    # compute_local_loss side-effect of the PyTorch module: spectral norms of
    # the recurrent weight chunks.
    # TODO(synk): SVD-based spectral norm has no Pallas equivalent; plain JAX.
    ur, uz, uh = jnp.split(w_hh, 3, axis=0)
    norm_ur = jnp.linalg.norm(ur, ord=2)
    norm_uz = jnp.linalg.norm(uz, ord=2)
    norm_uh = jnp.linalg.norm(uh, ord=2)
    max_value = jnp.max(output)
    lmbd = max_value / 4 * norm_uz + norm_ur + max_value / 4 * norm_uh
    local_loss = (lmbd - 1.0) ** 2

    return output, local_loss


def init_gru_params(key, input_size, hidden_size):
    """Deterministic init matching torch.nn.GRU shapes (uniform +/- 1/sqrt(H))."""
    k = 1.0 / jnp.sqrt(hidden_size)
    k1, k2, k3, k4 = jax.random.split(key, 4)
    return {
        "w_ih": jax.random.uniform(k1, (3 * hidden_size, input_size), jnp.float32, -k, k),
        "w_hh": jax.random.uniform(k2, (3 * hidden_size, hidden_size), jnp.float32, -k, k),
        "b_ih": jax.random.uniform(k3, (3 * hidden_size,), jnp.float32, -k, k),
        "b_hh": jax.random.uniform(k4, (3 * hidden_size,), jnp.float32, -k, k),
    }


def gru_reference(x, params):
    """Pure-JAX reference (lax.scan) for correctness check."""
    B, T, I = x.shape
    H = params["w_hh"].shape[1]
    wih_t, whh_t = params["w_ih"].T, params["w_hh"].T
    b_ih, b_hh = params["b_ih"], params["b_hh"]

    def step(h, x_t):
        gi = x_t @ wih_t + b_ih
        gh = h @ whh_t + b_hh
        i_r, i_z, i_n = jnp.split(gi, 3, axis=-1)
        h_r, h_z, h_n = jnp.split(gh, 3, axis=-1)
        r = jax.nn.sigmoid(i_r + h_r)
        z = jax.nn.sigmoid(i_z + h_z)
        n = jnp.tanh(i_n + r * h_n)
        h_new = (1.0 - z) * n + z * h
        return h_new, h_new

    h0 = jnp.zeros((B, H), jnp.float32)
    _, ys = jax.lax.scan(step, h0, jnp.transpose(x, (1, 0, 2)))
    return jnp.transpose(ys, (1, 0, 2))


if __name__ == "__main__":
    batch, seq, input_size, hidden_size = 4, 8, 16, 32

    key = jax.random.PRNGKey(0)
    kx, kp = jax.random.split(key)
    x = jax.random.normal(kx, (batch, seq, input_size), jnp.float32)
    params = init_gru_params(kp, input_size, hidden_size)

    out, local_loss = gru_layer_forward(x, params)
    out = jax.block_until_ready(out)
    local_loss = jax.block_until_ready(local_loss)

    ref = gru_reference(x, params)
    assert out.shape == (batch, seq, hidden_size)
    assert jnp.allclose(out, ref, atol=1e-5, rtol=1e-5), "mismatch vs JAX reference"

    print("KERNEL_OK")
</pallas_src>

<mosaic_0001>
module attributes {stable_mosaic.version = 11 : i64} {
  func.func @_gru_recurrent_kernel(%arg0: i32, %arg1: i32, %arg2: memref<8x8x384xf32, #tpu.memory_space<vmem>>, %arg3: memref<128x384xf32, #tpu.memory_space<vmem>>, %arg4: memref<1x128xf32, #tpu.memory_space<vmem>>, %arg5: memref<8x128xf32, #tpu.memory_space<vmem>>, %arg6: memref<8x8x128xf32, #tpu.memory_space<vmem>>, %arg7: memref<8x128xf32, #tpu.memory_space<vmem>>) attributes {dimension_semantics = [#tpu.dimension_semantics<parallel>, #tpu.dimension_semantics<arbitrary>], iteration_bounds = array<i64: 1, 1>, scalar_prefetch = 0 : i64, scratch_operands = 1 : i64, tpu.core_type = #tpu.core_type<tc>, window_params = [{transform_indices = @transform_0, window_bounds = array<i64: 8, 8, 384>}, {pipeline_mode = #tpu.pipeline_mode<synchronous>, transform_indices = @transform_1, window_bounds = array<i64: 128, 384>}, {pipeline_mode = #tpu.pipeline_mode<synchronous>, transform_indices = @transform_2, window_bounds = array<i64: 1, 128>}, {transform_indices = @transform_3, window_bounds = array<i64: 8, 128>}, {transform_indices = @transform_4, window_bounds = array<i64: 8, 8, 128>}]} {
    %c0_i32 = arith.constant 0 : i32
    %0 = arith.cmpi eq, %arg1, %c0_i32 : i32
    %1 = arith.extui %0 : i1 to i32
    %c0_i32_0 = arith.constant 0 : i32
    %2 = arith.cmpi ne, %1, %c0_i32_0 : i32
    scf.if %2 {
      %c0_72 = arith.constant 0 : index
      %c0_73 = arith.constant 0 : index
      %295 = vector.load %arg5[%c0_72, %c0_73] : memref<8x128xf32, #tpu.memory_space<vmem>>, vector<8x128xf32>
      %c0_74 = arith.constant 0 : index
      %c0_75 = arith.constant 0 : index
      %296 = vector.load %arg7[%c0_74, %c0_75] : memref<8x128xf32, #tpu.memory_space<vmem>>, vector<8x128xf32>
      tpu.vector_store %arg7[%c0_74, %c0_75], %295 {strides = array<i32>} : memref<8x128xf32, #tpu.memory_space<vmem>>, vector<8x128xf32>,
    } else {
    }
    %c0 = arith.constant 0 : index
    %c0_1 = arith.constant 0 : index
    %3 = vector.load %arg7[%c0, %c0_1] : memref<8x128xf32, #tpu.memory_space<vmem>>, vector<8x128xf32>
    %c0_2 = arith.constant 0 : index
    %c0_3 = arith.constant 0 : index
    %4 = vector.load %arg3[%c0_2, %c0_3] : memref<128x384xf32, #tpu.memory_space<vmem>>, vector<128x384xf32>
    %c0_4 = arith.constant 0 : index
    %c0_5 = arith.constant 0 : index
    %5 = vector.load %arg4[%c0_4, %c0_5] : memref<1x128xf32, #tpu.memory_space<vmem>>, vector<1x128xf32>
    %c0_i32_6 = arith.constant 0 : i32
    %6 = arith.index_cast %c0_i32_6 : i32 to index
    %c0_7 = arith.constant 0 : index
    %c0_8 = arith.constant 0 : index
    %7 = vector.load %arg2[%6, %c0_7, %c0_8] : memref<8x8x384xf32, #tpu.memory_space<vmem>>, vector<1x8x384xf32>
    %8 = vector.shape_cast %7 : vector<1x8x384xf32> to vector<8x384xf32>
    %cst = arith.constant dense<0.000000e+00> : vector<8x384xf32>
    %9 = tpu.matmul %3, %4, %cst {dimension_numbers = #tpu.dot_dimension_numbers<[1], [0], [0], [1], [0, 0, 1, 1], [], []>} : vector<8x128xf32>, vector<128x384xf32>, vector<8x384xf32> -> vector<8x384xf32>
    %10 = vector.extract_strided_slice %8 {offsets = [0, 0], sizes = [8, 128], strides = [1, 1]} : vector<8x384xf32> to vector<8x128xf32>
    %11 = vector.extract_strided_slice %9 {offsets = [0, 0], sizes = [8, 128], strides = [1, 1]} : vector<8x384xf32> to vector<8x128xf32>
    %12 = arith.addf %10, %11 : vector<8x128xf32>
    %13 = arith.negf %12 : vector<8x128xf32>
    %14 = math.exp %13 : vector<8x128xf32>
    %cst_9 = arith.constant 1.000000e+00 : f32
    %15 = vector.broadcast %cst_9 : f32 to vector<8x128xf32>
    %16 = arith.addf %15, %14 : vector<8x128xf32>
    %17 = arith.divf %15, %16 : vector<8x128xf32>
    %18 = vector.extract_strided_slice %8 {offsets = [0, 128], sizes = [8, 128], strides = [1, 1]} : vector<8x384xf32> to vector<8x128xf32>
    %19 = vector.extract_strided_slice %9 {offsets = [0, 128], sizes = [8, 128], strides = [1, 1]} : vector<8x384xf32> to vector<8x128xf32>
    %20 = arith.addf %18, %19 : vector<8x128xf32>
    %21 = arith.negf %20 : vector<8x128xf32>
    %22 = math.exp %21 : vector<8x128xf32>
    %cst_10 = arith.constant 1.000000e+00 : f32
    %23 = vector.broadcast %cst_10 : f32 to vector<8x128xf32>
    %24 = arith.addf %23, %22 : vector<8x128xf32>
    %25 = arith.divf %23, %24 : vector<8x128xf32>
    %26 = vector.extract_strided_slice %8 {offsets = [0, 256], sizes = [8, 128], strides = [1, 1]} : vector<8x384xf32> to vector<8x128xf32>
    %27 = vector.extract_strided_slice %9 {offsets = [0, 256], sizes = [8, 128], strides = [1, 1]} : vector<8x384xf32> to vector<8x128xf32>
    %28 = vector.broadcast %5 : vector<1x128xf32> to vector<8x128xf32>
    %29 = arith.addf %27, %28 : vector<8x128xf32>
    %30 = arith.mulf %17, %29 : vector<8x128xf32>
    %31 = arith.addf %26, %30 : vector<8x128xf32>
    %32 = math.tanh %31 : vector<8x128xf32>
    %cst_11 = arith.constant 1.000000e+00 : f32
    %33 = vector.broadcast %cst_11 : f32 to vector<8x128xf32>
    %34 = arith.subf %33, %25 : vector<8x128xf32>
    %35 = arith.mulf %34, %32 : vector<8x128xf32>
    %36 = arith.mulf %25, %3 : vector<8x128xf32>
    %37 = arith.addf %35, %36 : vector<8x128xf32>
    %38 = arith.index_cast %c0_i32_6 : i32 to index
    %c0_12 = arith.constant 0 : index
    %c0_13 = arith.constant 0 : index
    %39 = vector.load %arg6[%38, %c0_12, %c0_13] : memref<8x8x128xf32, #tpu.memory_space<vmem>>, vector<1x8x128xf32>
    %40 = vector.shape_cast %39 : vector<1x8x128xf32> to vector<8x128xf32>
    %41 = vector.shape_cast %37 : vector<8x128xf32> to vector<1x8x128xf32>
    tpu.vector_store %arg6[%38, %c0_12, %c0_13], %41 {strides = array<i32>} : memref<8x8x128xf32, #tpu.memory_space<vmem>>, vector<1x8x128xf32>,
    %c1_i32 = arith.constant 1 : i32
    %42 = arith.index_cast %c1_i32 : i32 to index
    %c0_14 = arith.constant 0 : index
    %c0_15 = arith.constant 0 : index
    %43 = vector.load %arg2[%42, %c0_14, %c0_15] : memref<8x8x384xf32, #tpu.memory_space<vmem>>, vector<1x8x384xf32>
    %44 = vector.shape_cast %43 : vector<1x8x384xf32> to vector<8x384xf32>
    %cst_16 = arith.constant dense<0.000000e+00> : vector<8x384xf32>
    %45 = tpu.matmul %37, %4, %cst_16 {dimension_numbers = #tpu.dot_dimension_numbers<[1], [0], [0], [1], [0, 0, 1, 1], [], []>} : vector<8x128xf32>, vector<128x384xf32>, vector<8x384xf32> -> vector<8x384xf32>
    %46 = vector.extract_strided_slice %44 {offsets = [0, 0], sizes = [8, 128], strides = [1, 1]} : vector<8x384xf32> to vector<8x128xf32>
    %47 = vector.extract_strided_slice %45 {offsets = [0, 0], sizes = [8, 128], strides = [1, 1]} : vector<8x384xf32> to vector<8x128xf32>
    %48 = arith.addf %46, %47 : vector<8x128xf32>
    %49 = arith.negf %48 : vector<8x128xf32>
    %50 = math.exp %49 : vector<8x128xf32>
    %cst_17 = arith.constant 1.000000e+00 : f32
    %51 = vector.broadcast %cst_17 : f32 to vector<8x128xf32>
    %52 = arith.addf %51, %50 : vector<8x128xf32>
    %53 = arith.divf %51, %52 : vector<8x128xf32>
    %54 = vector.extract_strided_slice %44 {offsets = [0, 128], sizes = [8, 128], strides = [1, 1]} : vector<8x384xf32> to vector<8x128xf32>
    %55 = vector.extract_strided_slice %45 {offsets = [0, 128], sizes = [8, 128], strides = [1, 1]} : vector<8x384xf32> to vector<8x128xf32>
    %56 = arith.addf %54, %55 : vector<8x128xf32>
    %57 = arith.negf %56 : vector<8x128xf32>
    %58 = math.exp %57 : vector<8x128xf32>
    %cst_18 = arith.constant 1.000000e+00 : f32
    %59 = vector.broadcast %cst_18 : f32 to vector<8x128xf32>
    %60 = arith.addf %59, %58 : vector<8x128xf32>
    %61 = arith.divf %59, %60 : vector<8x128xf32>
    %62 = vector.extract_strided_slice %44 {offsets = [0, 256], sizes = [8, 128], strides = [1, 1]} : vector<8x384xf32> to vector<8x128xf32>
    %63 = vector.extract_strided_slice %45 {offsets = [0, 256], sizes = [8, 128], strides = [1, 1]} : vector<8x384xf32> to vector<8x128xf32>
    %64 = vector.broadcast %5 : vector<1x128xf32> to vector<8x128xf32>
    %65 = arith.addf %63, %64 : vector<8x128xf32>
    %66 = arith.mulf %53, %65 : vector<8x128xf32>
    %67 = arith.addf %62, %66 : vector<8x128xf32>
    %68 = math.tanh %67 : vector<8x128xf32>
    %cst_19 = arith.constant 1.000000e+00 : f32
    %69 = vector.broadcast %cst_19 : f32 to vector<8x128xf32>
    %70 = arith.subf %69, %61 : vector<8x128xf32>
    %71 = arith.mulf %70, %68 : vector<8x128xf32>
    %72 = arith.mulf %61, %37 : vector<8x128xf32>
    %73 = arith.addf %71, %72 : vector<8x128xf32>
    %74 = arith.index_cast %c1_i32 : i32 to index
    %c0_20 = arith.constant 0 : index
    %c0_21 = arith.constant 0 : index
    %75 = vector.load %arg6[%74, %c0_20, %c0_21] : memref<8x8x128xf32, #tpu.memory_space<vmem>>, vector<1x8x128xf32>
    %76 = vector.shape_cast %75 : vector<1x8x128xf32> to vector<8x128xf32>
    %77 = vector.shape_cast %73 : vector<8x128xf32> to vector<1x8x128xf32>
    tpu.vector_store %arg6[%74, %c0_20, %c0_21], %77 {strides = array<i32>} : memref<8x8x128xf32, #tpu.memory_space<vmem>>, vector<1x8x128xf32>,
    %c2_i32 = arith.constant 2 : i32
    %78 = arith.index_cast %c2_i32 : i32 to index
    %c0_22 = arith.constant 0 : index
    %c0_23 = arith.constant 0 : index
    %79 = vector.load %arg2[%78, %c0_22, %c0_23] : memref<8x8x384xf32, #tpu.memory_space<vmem>>, vector<1x8x384xf32>
    %80 = vector.shape_cast %79 : vector<1x8x384xf32> to vector<8x384xf32>
    %cst_24 = arith.constant dense<0.000000e+00> : vector<8x384xf32>
    %81 = tpu.matmul %73, %4, %cst_24 {dimension_numbers = #tpu.dot_dimension_numbers<[1], [0], [0], [1], [0, 0, 1, 1], [], []>} : vector<8x128xf32>, vector<128x384xf32>, vector<8x384xf32> -> vector<8x384xf32>
    %82 = vector.extract_strided_slice %80 {offsets = [0, 0], sizes = [8, 128], strides = [1, 1]} : vector<8x384xf32> to vector<8x128xf32>
    %83 = vector.extract_strided_slice %81 {offsets = [0, 0], sizes = [8, 128], strides = [1, 1]} : vector<8x384xf32> to vector<8x128xf32>
    %84 = arith.addf %82, %83 : vector<8x128xf32>
    %85 = arith.negf %84 : vector<8x128xf32>
    %86 = math.exp %85 : vector<8x128xf32>
    %cst_25 = arith.constant 1.000000e+00 : f32
    %87 = vector.broadcast %cst_25 : f32 to vector<8x128xf32>
    %88 = arith.addf %87, %86 : vector<8x128xf32>
    %89 = arith.divf %87, %88 : vector<8x128xf32>
    %90 = vector.extract_strided_slice %80 {offsets = [0, 128], sizes = [8, 128], strides = [1, 1]} : vector<8x384xf32> to vector<8x128xf32>
    %91 = vector.extract_strided_slice %81 {offsets = [0, 128], sizes = [8, 128], strides = [1, 1]} : vector<8x384xf32> to vector<8x128xf32>
    %92 = arith.addf %90, %91 : vector<8x128xf32>
    %93 = arith.negf %92 : vector<8x128xf32>
    %94 = math.exp %93 : vector<8x128xf32>
    %cst_26 = arith.constant 1.000000e+00 : f32
    %95 = vector.broadcast %cst_26 : f32 to vector<8x128xf32>
    %96 = arith.addf %95, %94 : vector<8x128xf32>
    %97 = arith.divf %95, %96 : vector<8x128xf32>
    %98 = vector.extract_strided_slice %80 {offsets = [0, 256], sizes = [8, 128], strides = [1, 1]} : vector<8x384xf32> to vector<8x128xf32>
    %99 = vector.extract_strided_slice %81 {offsets = [0, 256], sizes = [8, 128], strides = [1, 1]} : vector<8x384xf32> to vector<8x128xf32>
    %100 = vector.broadcast %5 : vector<1x128xf32> to vector<8x128xf32>
    %101 = arith.addf %99, %100 : vector<8x128xf32>
    %102 = arith.mulf %89, %101 : vector<8x128xf32>
    %103 = arith.addf %98, %102 : vector<8x128xf32>
    %104 = math.tanh %103 : vector<8x128xf32>
    %cst_27 = arith.constant 1.000000e+00 : f32
    %105 = vector.broadcast %cst_27 : f32 to vector<8x128xf32>
    %106 = arith.subf %105, %97 : vector<8x128xf32>
    %107 = arith.mulf %106, %104 : vector<8x128xf32>
    %108 = arith.mulf %97, %73 : vector<8x128xf32>
    %109 = arith.addf %107, %108 : vector<8x128xf32>
    %110 = arith.index_cast %c2_i32 : i32 to index
    %c0_28 = arith.constant 0 : index
    %c0_29 = arith.constant 0 : index
    %111 = vector.load %arg6[%110, %c0_28, %c0_29] : memref<8x8x128xf32, #tpu.memory_space<vmem>>, vector<1x8x128xf32>
    %112 = vector.shape_cast %111 : vector<1x8x128xf32> to vector<8x128xf32>
    %113 = vector.shape_cast %109 : vector<8x128xf32> to vector<1x8x128xf32>
    tpu.vector_store %arg6[%110, %c0_28, %c0_29], %113 {strides = array<i32>} : memref<8x8x128xf32, #tpu.memory_space<vmem>>, vector<1x8x128xf32>,
    %c3_i32 = arith.constant 3 : i32
    %114 = arith.index_cast %c3_i32 : i32 to index
    %c0_30 = arith.constant 0 : index
    %c0_31 = arith.constant 0 : index
    %115 = vector.load %arg2[%114, %c0_30, %c0_31] : memref<8x8x384xf32, #tpu.memory_space<vmem>>, vector<1x8x384xf32>
    %116 = vector.shape_cast %115 : vector<1x8x384xf32> to vector<8x384xf32>
    %cst_32 = arith.constant dense<0.000000e+00> : vector<8x384xf32>
    %117 = tpu.matmul %109, %4, %cst_32 {dimension_numbers = #tpu.dot_dimension_numbers<[1], [0], [0], [1], [0, 0, 1, 1], [], []>} : vector<8x128xf32>, vector<128x384xf32>, vector<8x384xf32> -> vector<8x384xf32>
    %118 = vector.extract_strided_slice %116 {offsets = [0, 0], sizes = [8, 128], strides = [1, 1]} : vector<8x384xf32> to vector<8x128xf32>
    %119 = vector.extract_strided_slice %117 {offsets = [0, 0], sizes = [8, 128], strides = [1, 1]} : vector<8x384xf32> to vector<8x128xf32>
    %120 = arith.addf %118, %119 : vector<8x128xf32>
    %121 = arith.negf %120 : vector<8x128xf32>
    %122 = math.exp %121 : vector<8x128xf32>
    %cst_33 = arith.constant 1.000000e+00 : f32
    %123 = vector.broadcast %cst_33 : f32 to vector<8x128xf32>
    %124 = arith.addf %123, %122 : vector<8x128xf32>
    %125 = arith.divf %123, %124 : vector<8x128xf32>
    %126 = vector.extract_strided_slice %116 {offsets = [0, 128], sizes = [8, 128], strides = [1, 1]} : vector<8x384xf32> to vector<8x128xf32>
    %127 = vector.extract_strided_slice %117 {offsets = [0, 128], sizes = [8, 128], strides = [1, 1]} : vector<8x384xf32> to vector<8x128xf32>
    %128 = arith.addf %126, %127 : vector<8x128xf32>
    %129 = arith.negf %128 : vector<8x128xf32>
    %130 = math.exp %129 : vector<8x128xf32>
    %cst_34 = arith.constant 1.000000e+00 : f32
    %131 = vector.broadcast %cst_34 : f32 to vector<8x128xf32>
    %132 = arith.addf %131, %130 : vector<8x128xf32>
    %133 = arith.divf %131, %132 : vector<8x128xf32>
    %134 = vector.extract_strided_slice %116 {offsets = [0, 256], sizes = [8, 128], strides = [1, 1]} : vector<8x384xf32> to vector<8x128xf32>
    %135 = vector.extract_strided_slice %117 {offsets = [0, 256], sizes = [8, 128], strides = [1, 1]} : vector<8x384xf32> to vector<8x128xf32>
    %136 = vector.broadcast %5 : vector<1x128xf32> to vector<8x128xf32>
    %137 = arith.addf %135, %136 : vector<8x128xf32>
    %138 = arith.mulf %125, %137 : vector<8x128xf32>
    %139 = arith.addf %134, %138 : vector<8x128xf32>
    %140 = math.tanh %139 : vector<8x128xf32>
    %cst_35 = arith.constant 1.000000e+00 : f32
    %141 = vector.broadcast %cst_35 : f32 to vector<8x128xf32>
    %142 = arith.subf %141, %133 : vector<8x128xf32>
    %143 = arith.mulf %142, %140 : vector<8x128xf32>
    %144 = arith.mulf %133, %109 : vector<8x128xf32>
    %145 = arith.addf %143, %144 : vector<8x128xf32>
    %146 = arith.index_cast %c3_i32 : i32 to index
    %c0_36 = arith.constant 0 : index
    %c0_37 = arith.constant 0 : index
    %147 = vector.load %arg6[%146, %c0_36, %c0_37] : memref<8x8x128xf32, #tpu.memory_space<vmem>>, vector<1x8x128xf32>
    %148 = vector.shape_cast %147 : vector<1x8x128xf32> to vector<8x128xf32>
    %149 = vector.shape_cast %145 : vector<8x128xf32> to vector<1x8x128xf32>
    tpu.vector_store %arg6[%146, %c0_36, %c0_37], %149 {strides = array<i32>} : memref<8x8x128xf32, #tpu.memory_space<vmem>>, vector<1x8x128xf32>,
    %c4_i32 = arith.constant 4 : i32
    %150 = arith.index_cast %c4_i32 : i32 to index
    %c0_38 = arith.constant 0 : index
    %c0_39 = arith.constant 0 : index
    %151 = vector.load %arg2[%150, %c0_38, %c0_39] : memref<8x8x384xf32, #tpu.memory_space<vmem>>, vector<1x8x384xf32>
    %152 = vector.shape_cast %151 : vector<1x8x384xf32> to vector<8x384xf32>
    %cst_40 = arith.constant dense<0.000000e+00> : vector<8x384xf32>
    %153 = tpu.matmul %145, %4, %cst_40 {dimension_numbers = #tpu.dot_dimension_numbers<[1], [0], [0], [1], [0, 0, 1, 1], [], []>} : vector<8x128xf32>, vector<128x384xf32>, vector<8x384xf32> -> vector<8x384xf32>
    %154 = vector.extract_strided_slice %152 {offsets = [0, 0], sizes = [8, 128], strides = [1, 1]} : vector<8x384xf32> to vector<8x128xf32>
    %155 = vector.extract_strided_slice %153 {offsets = [0, 0], sizes = [8, 128], strides = [1, 1]} : vector<8x384xf32> to vector<8x128xf32>
    %156 = arith.addf %154, %155 : vector<8x128xf32>
    %157 = arith.negf %156 : vector<8x128xf32>
    %158 = math.exp %157 : vector<8x128xf32>
    %cst_41 = arith.constant 1.000000e+00 : f32
    %159 = vector.broadcast %cst_41 : f32 to vector<8x128xf32>
    %160 = arith.addf %159, %158 : vector<8x128xf32>
    %161 = arith.divf %159, %160 : vector<8x128xf32>
    %162 = vector.extract_strided_slice %152 {offsets = [0, 128], sizes = [8, 128], strides = [1, 1]} : vector<8x384xf32> to vector<8x128xf32>
    %163 = vector.extract_strided_slice %153 {offsets = [0, 128], sizes = [8, 128], strides = [1, 1]} : vector<8x384xf32> to vector<8x128xf32>
    %164 = arith.addf %162, %163 : vector<8x128xf32>
    %165 = arith.negf %164 : vector<8x128xf32>
    %166 = math.exp %165 : vector<8x128xf32>
    %cst_42 = arith.constant 1.000000e+00 : f32
    %167 = vector.broadcast %cst_42 : f32 to vector<8x128xf32>
    %168 = arith.addf %167, %166 : vector<8x128xf32>
    %169 = arith.divf %167, %168 : vector<8x128xf32>
    %170 = vector.extract_strided_slice %152 {offsets = [0, 256], sizes = [8, 128], strides = [1, 1]} : vector<8x384xf32> to vector<8x128xf32>
    %171 = vector.extract_strided_slice %153 {offsets = [0, 256], sizes = [8, 128], strides = [1, 1]} : vector<8x384xf32> to vector<8x128xf32>
    %172 = vector.broadcast %5 : vector<1x128xf32> to vector<8x128xf32>
    %173 = arith.addf %171, %172 : vector<8x128xf32>
    %174 = arith.mulf %161, %173 : vector<8x128xf32>
    %175 = arith.addf %170, %174 : vector<8x128xf32>
    %176 = math.tanh %175 : vector<8x128xf32>
    %cst_43 = arith.constant 1.000000e+00 : f32
    %177 = vector.broadcast %cst_43 : f32 to vector<8x128xf32>
    %178 = arith.subf %177, %169 : vector<8x128xf32>
    %179 = arith.mulf %178, %176 : vector<8x128xf32>
    %180 = arith.mulf %169, %145 : vector<8x128xf32>
    %181 = arith.addf %179, %180 : vector<8x128xf32>
    %182 = arith.index_cast %c4_i32 : i32 to index
    %c0_44 = arith.constant 0 : index
    %c0_45 = arith.constant 0 : index
    %183 = vector.load %arg6[%182, %c0_44, %c0_45] : memref<8x8x128xf32, #tpu.memory_space<vmem>>, vector<1x8x128xf32>
    %184 = vector.shape_cast %183 : vector<1x8x128xf32> to vector<8x128xf32>
    %185 = vector.shape_cast %181 : vector<8x128xf32> to vector<1x8x128xf32>
    tpu.vector_store %arg6[%182, %c0_44, %c0_45], %185 {strides = array<i32>} : memref<8x8x128xf32, #tpu.memory_space<vmem>>, vector<1x8x128xf32>,
    %c5_i32 = arith.constant 5 : i32
    %186 = arith.index_cast %c5_i32 : i32 to index
    %c0_46 = arith.constant 0 : index
    %c0_47 = arith.constant 0 : index
    %187 = vector.load %arg2[%186, %c0_46, %c0_47] : memref<8x8x384xf32, #tpu.memory_space<vmem>>, vector<1x8x384xf32>
    %188 = vector.shape_cast %187 : vector<1x8x384xf32> to vector<8x384xf32>
    %cst_48 = arith.constant dense<0.000000e+00> : vector<8x384xf32>
    %189 = tpu.matmul %181, %4, %cst_48 {dimension_numbers = #tpu.dot_dimension_numbers<[1], [0], [0], [1], [0, 0, 1, 1], [], []>} : vector<8x128xf32>, vector<128x384xf32>, vector<8x384xf32> -> vector<8x384xf32>
    %190 = vector.extract_strided_slice %188 {offsets = [0, 0], sizes = [8, 128], strides = [1, 1]} : vector<8x384xf32> to vector<8x128xf32>
    %191 = vector.extract_strided_slice %189 {offsets = [0, 0], sizes = [8, 128], strides = [1, 1]} : vector<8x384xf32> to vector<8x128xf32>
    %192 = arith.addf %190, %191 : vector<8x128xf32>
    %193 = arith.negf %192 : vector<8x128xf32>
    %194 = math.exp %193 : vector<8x128xf32>
    %cst_49 = arith.constant 1.000000e+00 : f32
    %195 = vector.broadcast %cst_49 : f32 to vector<8x128xf32>
    %196 = arith.addf %195, %194 : vector<8x128xf32>
    %197 = arith.divf %195, %196 : vector<8x128xf32>
    %198 = vector.extract_strided_slice %188 {offsets = [0, 128], sizes = [8, 128], strides = [1, 1]} : vector<8x384xf32> to vector<8x128xf32>
    %199 = vector.extract_strided_slice %189 {offsets = [0, 128], sizes = [8, 128], strides = [1, 1]} : vector<8x384xf32> to vector<8x128xf32>
    %200 = arith.addf %198, %199 : vector<8x128xf32>
    %201 = arith.negf %200 : vector<8x128xf32>
    %202 = math.exp %201 : vector<8x128xf32>
    %cst_50 = arith.constant 1.000000e+00 : f32
    %203 = vector.broadcast %cst_50 : f32 to vector<8x128xf32>
    %204 = arith.addf %203, %202 : vector<8x128xf32>
    %205 = arith.divf %203, %204 : vector<8x128xf32>
    %206 = vector.extract_strided_slice %188 {offsets = [0, 256], sizes = [8, 128], strides = [1, 1]} : vector<8x384xf32> to vector<8x128xf32>
    %207 = vector.extract_strided_slice %189 {offsets = [0, 256], sizes = [8, 128], strides = [1, 1]} : vector<8x384xf32> to vector<8x128xf32>
    %208 = vector.broadcast %5 : vector<1x128xf32> to vector<8x128xf32>
    %209 = arith.addf %207, %208 : vector<8x128xf32>
    %210 = arith.mulf %197, %209 : vector<8x128xf32>
    %211 = arith.addf %206, %210 : vector<8x128xf32>
    %212 = math.tanh %211 : vector<8x128xf32>
    %cst_51 = arith.constant 1.000000e+00 : f32
    %213 = vector.broadcast %cst_51 : f32 to vector<8x128xf32>
    %214 = arith.subf %213, %205 : vector<8x128xf32>
    %215 = arith.mulf %214, %212 : vector<8x128xf32>
    %216 = arith.mulf %205, %181 : vector<8x128xf32>
    %217 = arith.addf %215, %216 : vector<8x128xf32>
    %218 = arith.index_cast %c5_i32 : i32 to index
    %c0_52 = arith.constant 0 : index
    %c0_53 = arith.constant 0 : index
    %219 = vector.load %arg6[%218, %c0_52, %c0_53] : memref<8x8x128xf32, #tpu.memory_space<vmem>>, vector<1x8x128xf32>
    %220 = vector.shape_cast %219 : vector<1x8x128xf32> to vector<8x128xf32>
    %221 = vector.shape_cast %217 : vector<8x128xf32> to vector<1x8x128xf32>
    tpu.vector_store %arg6[%218, %c0_52, %c0_53], %221 {strides = array<i32>} : memref<8x8x128xf32, #tpu.memory_space<vmem>>, vector<1x8x128xf32>,
    %c6_i32 = arith.constant 6 : i32
    %222 = arith.index_cast %c6_i32 : i32 to index
    %c0_54 = arith.constant 0 : index
    %c0_55 = arith.constant 0 : index
    %223 = vector.load %arg2[%222, %c0_54, %c0_55] : memref<8x8x384xf32, #tpu.memory_space<vmem>>, vector<1x8x384xf32>
    %224 = vector.shape_cast %223 : vector<1x8x384xf32> to vector<8x384xf32>
    %cst_56 = arith.constant dense<0.000000e+00> : vector<8x384xf32>
    %225 = tpu.matmul %217, %4, %cst_56 {dimension_numbers = #tpu.dot_dimension_numbers<[1], [0], [0], [1], [0, 0, 1, 1], [], []>} : vector<8x128xf32>, vector<128x384xf32>, vector<8x384xf32> -> vector<8x384xf32>
    %226 = vector.extract_strided_slice %224 {offsets = [0, 0], sizes = [8, 128], strides = [1, 1]} : vector<8x384xf32> to vector<8x128xf32>
    %227 = vector.extract_strided_slice %225 {offsets = [0, 0], sizes = [8, 128], strides = [1, 1]} : vector<8x384xf32> to vector<8x128xf32>
    %228 = arith.addf %226, %227 : vector<8x128xf32>
    %229 = arith.negf %228 : vector<8x128xf32>
    %230 = math.exp %229 : vector<8x128xf32>
    %cst_57 = arith.constant 1.000000e+00 : f32
    %231 = vector.broadcast %cst_57 : f32 to vector<8x128xf32>
    %232 = arith.addf %231, %230 : vector<8x128xf32>
    %233 = arith.divf %231, %232 : vector<8x128xf32>
    %234 = vector.extract_strided_slice %224 {offsets = [0, 128], sizes = [8, 128], strides = [1, 1]} : vector<8x384xf32> to vector<8x128xf32>
    %235 = vector.extract_strided_slice %225 {offsets = [0, 128], sizes = [8, 128], strides = [1, 1]} : vector<8x384xf32> to vector<8x128xf32>
    %236 = arith.addf %234, %235 : vector<8x128xf32>
    %237 = arith.negf %236 : vector<8x128xf32>
    %238 = math.exp %237 : vector<8x128xf32>
    %cst_58 = arith.constant 1.000000e+00 : f32
    %239 = vector.broadcast %cst_58 : f32 to vector<8x128xf32>
    %240 = arith.addf %239, %238 : vector<8x128xf32>
    %241 = arith.divf %239, %240 : vector<8x128xf32>
    %242 = vector.extract_strided_slice %224 {offsets = [0, 256], sizes = [8, 128], strides = [1, 1]} : vector<8x384xf32> to vector<8x128xf32>
    %243 = vector.extract_strided_slice %225 {offsets = [0, 256], sizes = [8, 128], strides = [1, 1]} : vector<8x384xf32> to vector<8x128xf32>
    %244 = vector.broadcast %5 : vector<1x128xf32> to vector<8x128xf32>
    %245 = arith.addf %243, %244 : vector<8x128xf32>
    %246 = arith.mulf %233, %245 : vector<8x128xf32>
    %247 = arith.addf %242, %246 : vector<8x128xf32>
    %248 = math.tanh %247 : vector<8x128xf32>
    %cst_59 = arith.constant 1.000000e+00 : f32
    %249 = vector.broadcast %cst_59 : f32 to vector<8x128xf32>
    %250 = arith.subf %249, %241 : vector<8x128xf32>
    %251 = arith.mulf %250, %248 : vector<8x128xf32>
    %252 = arith.mulf %241, %217 : vector<8x128xf32>
    %253 = arith.addf %251, %252 : vector<8x128xf32>
    %254 = arith.index_cast %c6_i32 : i32 to index
    %c0_60 = arith.constant 0 : index
    %c0_61 = arith.constant 0 : index
    %255 = vector.load %arg6[%254, %c0_60, %c0_61] : memref<8x8x128xf32, #tpu.memory_space<vmem>>, vector<1x8x128xf32>
    %256 = vector.shape_cast %255 : vector<1x8x128xf32> to vector<8x128xf32>
    %257 = vector.shape_cast %253 : vector<8x128xf32> to vector<1x8x128xf32>
    tpu.vector_store %arg6[%254, %c0_60, %c0_61], %257 {strides = array<i32>} : memref<8x8x128xf32, #tpu.memory_space<vmem>>, vector<1x8x128xf32>,
    %c7_i32 = arith.constant 7 : i32
    %258 = arith.index_cast %c7_i32 : i32 to index
    %c0_62 = arith.constant 0 : index
    %c0_63 = arith.constant 0 : index
    %259 = vector.load %arg2[%258, %c0_62, %c0_63] : memref<8x8x384xf32, #tpu.memory_space<vmem>>, vector<1x8x384xf32>
    %260 = vector.shape_cast %259 : vector<1x8x384xf32> to vector<8x384xf32>
    %cst_64 = arith.constant dense<0.000000e+00> : vector<8x384xf32>
    %261 = tpu.matmul %253, %4, %cst_64 {dimension_numbers = #tpu.dot_dimension_numbers<[1], [0], [0], [1], [0, 0, 1, 1], [], []>} : vector<8x128xf32>, vector<128x384xf32>, vector<8x384xf32> -> vector<8x384xf32>
    %262 = vector.extract_strided_slice %260 {offsets = [0, 0], sizes = [8, 128], strides = [1, 1]} : vector<8x384xf32> to vector<8x128xf32>
    %263 = vector.extract_strided_slice %261 {offsets = [0, 0], sizes = [8, 128], strides = [1, 1]} : vector<8x384xf32> to vector<8x128xf32>
    %264 = arith.addf %262, %263 : vector<8x128xf32>
    %265 = arith.negf %264 : vector<8x128xf32>
    %266 = math.exp %265 : vector<8x128xf32>
    %cst_65 = arith.constant 1.000000e+00 : f32
    %267 = vector.broadcast %cst_65 : f32 to vector<8x128xf32>
    %268 = arith.addf %267, %266 : vector<8x128xf32>
    %269 = arith.divf %267, %268 : vector<8x128xf32>
    %270 = vector.extract_strided_slice %260 {offsets = [0, 128], sizes = [8, 128], strides = [1, 1]} : vector<8x384xf32> to vector<8x128xf32>
    %271 = vector.extract_strided_slice %261 {offsets = [0, 128], sizes = [8, 128], strides = [1, 1]} : vector<8x384xf32> to vector<8x128xf32>
    %272 = arith.addf %270, %271 : vector<8x128xf32>
    %273 = arith.negf %272 : vector<8x128xf32>
    %274 = math.exp %273 : vector<8x128xf32>
    %cst_66 = arith.constant 1.000000e+00 : f32
    %275 = vector.broadcast %cst_66 : f32 to vector<8x128xf32>
    %276 = arith.addf %275, %274 : vector<8x128xf32>
    %277 = arith.divf %275, %276 : vector<8x128xf32>
    %278 = vector.extract_strided_slice %260 {offsets = [0, 256], sizes = [8, 128], strides = [1, 1]} : vector<8x384xf32> to vector<8x128xf32>
    %279 = vector.extract_strided_slice %261 {offsets = [0, 256], sizes = [8, 128], strides = [1, 1]} : vector<8x384xf32> to vector<8x128xf32>
    %280 = vector.broadcast %5 : vector<1x128xf32> to vector<8x128xf32>
    %281 = arith.addf %279, %280 : vector<8x128xf32>
    %282 = arith.mulf %269, %281 : vector<8x128xf32>
    %283 = arith.addf %278, %282 : vector<8x128xf32>
    %284 = math.tanh %283 : vector<8x128xf32>
    %cst_67 = arith.constant 1.000000e+00 : f32
    %285 = vector.broadcast %cst_67 : f32 to vector<8x128xf32>
    %286 = arith.subf %285, %277 : vector<8x128xf32>
    %287 = arith.mulf %286, %284 : vector<8x128xf32>
    %288 = arith.mulf %277, %253 : vector<8x128xf32>
    %289 = arith.addf %287, %288 : vector<8x128xf32>
    %290 = arith.index_cast %c7_i32 : i32 to index
    %c0_68 = arith.constant 0 : index
    %c0_69 = arith.constant 0 : index
    %291 = vector.load %arg6[%290, %c0_68, %c0_69] : memref<8x8x128xf32, #tpu.memory_space<vmem>>, vector<1x8x128xf32>
    %292 = vector.shape_cast %291 : vector<1x8x128xf32> to vector<8x128xf32>
    %293 = vector.shape_cast %289 : vector<8x128xf32> to vector<1x8x128xf32>
    tpu.vector_store %arg6[%290, %c0_68, %c0_69], %293 {strides = array<i32>} : memref<8x8x128xf32, #tpu.memory_space<vmem>>, vector<1x8x128xf32>,
    %c8_i32 = arith.constant 8 : i32
    %c0_70 = arith.constant 0 : index
    %c0_71 = arith.constant 0 : index
    %294 = vector.load %arg7[%c0_70, %c0_71] : memref<8x128xf32, #tpu.memory_space<vmem>>, vector<8x128xf32>
    tpu.vector_store %arg7[%c0_70, %c0_71], %289 {strides = array<i32>} : memref<8x128xf32, #tpu.memory_space<vmem>>, vector<8x128xf32>,
    return
  }
  func.func @transform_0(%arg0: i32, %arg1: i32) -> (i32, i32, i32) {
    %c0_i32 = arith.constant 0 : i32
    %c0_i32_0 = arith.constant 0 : i32
    return %arg1, %arg0, %c0_i32 : i32, i32, i32
  }
  func.func @transform_1(%arg0: i32, %arg1: i32) -> (i32, i32) {
    %c0_i32 = arith.constant 0 : i32
    %c0_i32_0 = arith.constant 0 : i32
    %c0_i32_1 = arith.constant 0 : i32
    return %c0_i32, %c0_i32_0 : i32, i32
  }
  func.func @transform_2(%arg0: i32, %arg1: i32) -> (i32, i32) {
    %c0_i32 = arith.constant 0 : i32
    %c0_i32_0 = arith.constant 0 : i32
    %c0_i32_1 = arith.constant 0 : i32
    return %c0_i32, %c0_i32_0 : i32, i32
  }
  func.func @transform_3(%arg0: i32, %arg1: i32) -> (i32, i32) {
    %c0_i32 = arith.constant 0 : i32
    %c0_i32_0 = arith.constant 0 : i32
    return %arg0, %c0_i32 : i32, i32
  }
  func.func @transform_4(%arg0: i32, %arg1: i32) -> (i32, i32, i32) {
    %c0_i32 = arith.constant 0 : i32
    %c0_i32_0 = arith.constant 0 : i32
    return %arg1, %arg0, %c0_i32 : i32, i32, i32
  }
}

</mosaic_0001>

<bundles_post_ra>
// kernel: tpu_custom_call.1
= control target key start
LH: loop header
LB: loop body
LE: loop exit
PB: predicated region body
PF: predicated region fallthrough
CT: control target
= control target key end

     0   :  { %9 = vsyncpa [#allocation4], 0  ;;  %s2976_s0 = inlined_call_operand.hbm [shape: f32[8,8,384], index: 0, kind: input, shape index: {}]   ;;  %s2977_s1 = inlined_call_operand.hbm [shape: f32[128,384], index: 1, kind: input, shape index: {}]   ;;  %s2978_s2 = inlined_call_operand.vmem [shape: f32[1,128], index: 2, kind: input, shape index: {}]   ;;  %s2979_s3 = inlined_call_operand.vmem [shape: f32[8,128], index: 3, kind: input, shape index: {}]   ;;  %s2980_s4 = inlined_call_operand.hbm [shape: f32[8,8,128], index: 4, kind: output, shape index: {}]  }
   0x1   :  { %10 = vsyncpa [#allocation7], 0 }
   0x2   :  { %11 = vsyncpa [#allocation5], 0  ;;  %s2520_s15 = smov [#allocation3]   ;;  %s2448_s19 = scalar_lea.hbm %s2976_s0, 3072 }
   0x3   :  { %s17_s16 = sshll.u32 %s2520_s15, 4  ;;  %p2449_p0 = scmp.ne.s32.totalorder %s2976_s0, %s2448_s19  ;;  %s18_s16 = int_to_ptr.vmem [resolvable:$true] %s17_s16 }
   0x4   :  { %p2452_p1 = scmp.lt.u32.totalorder %s2448_s19, %s2976_s0 }
   0x6   :  { %p2454_p2 = pnand %p2452_p1, %p2449_p0 }
   0x8   :  { %2457 = shalt.err (!%p2454_p2)
}
   0x9   :  { %s2458_s24 = scalar_lea.vmem %s18_s16, 3072  ;;  %p2463_p4 = scmp.lt.s32.totalorder %s18_s16, %s18_s16 }
   0xa   :  { %p2459_p3 = scmp.ne.s32.totalorder %s18_s16, %s2458_s24  ;;  %p2464_p5 = scmp.lt.s32.totalorder %s2458_s24, %s2458_s24 }
   0xc   :  { %p2465_p6 = por %p2464_p5, %p2463_p4 }
   0xe   :  { %p2466_p7 = pnand %p2465_p6, %p2459_p3 }
  0x10   :  { %2469 = shalt.err (!%p2466_p7)
}
  0x11   :  { %s2521_s25 = smov 384   ;;  %s2522_s26 = smov 24  }
  0x12   :  { %23 = dma.hbm_to_vmem [thread:$0]  %s2976_s0, 3072, %s18_s16, [#allocation4], %s2521_s25, %s2521_s25, %s2522_s26  }
  0x13   :  { %s2523_s29 = smov [#allocation6]   ;;  %s2470_s7 = scalar_lea.hbm %s2977_s1, 6144 }
  0x14   :  { %s29_s30 = sshll.u32 %s2523_s29, 4  ;;  %p2471_p8 = scmp.ne.s32.totalorder %s2977_s1, %s2470_s7  ;;  %s30_s30 = int_to_ptr.vmem [resolvable:$true] %s29_s30 }
  0x15   :  { %p2474_p9 = scmp.lt.u32.totalorder %s2470_s7, %s2977_s1 }
  0x17   :  { %p2476_p10 = pnand %p2474_p9, %p2471_p8 }
  0x19   :  { %2479 = shalt.err (!%p2476_p10)
}
  0x1a   :  { %s2480_s12 = scalar_lea.vmem %s30_s30, 6144  ;;  %p2485_p12 = scmp.lt.s32.totalorder %s30_s30, %s30_s30 }
  0x1b   :  { %p2481_p11 = scmp.ne.s32.totalorder %s30_s30, %s2480_s12  ;;  %p2486_p13 = scmp.lt.s32.totalorder %s2480_s12, %s2480_s12 }
  0x1d   :  { %p2487_p0 = por %p2486_p13, %p2485_p12 }
  0x1f   :  { %p2488_p1 = pnand %p2487_p0, %p2481_p11 }
  0x21   :  { %2491 = shalt.err (!%p2488_p1)
}
  0x22   :  { %35 = dma.hbm_to_vmem [thread:$0]  %s2977_s1, 6144, %s30_s30, [#allocation7], %s2521_s25, %s2521_s25, %s2522_s26  }
  0x23   :  { %2514 = dma.done.wait [#allocation4], 3072  }
  0x24   :  { %2515 = vsyncadd [#allocation4], 4294964224 }
  0x25   :  { %2516 = dma.done.wait [#allocation7], 6144  }
  0x26   :  { %2517 = vsyncadd [#allocation7], 4294961152  ;;  %v2524_v0 = vmov 0.0|0.0   ;;  %v2525_v1 = vmov 0.0   ;;  %vm2526_vm0 = vmmov 0   ;;  %v54_v2 = vld [vmem:[#allocation6 + $0x8] sm:$0xff] }
  0x27   :  { %1942 = vmatprep.subr.bf16.mxu1 %v2524_v0  ;;  %169 = vmatprep.mubr.f32.mxu0 %v2525_v1  ;;  %v57_v3 = vld [vmem:[#allocation6 + $0x20] sm:$0xff]  ;;  %v56_v6 = vld [vmem:[#allocation6 + $0x18] sm:$0xff]  ;;  %v63_v8 = vld [vmem:[#allocation6 + $0x50] sm:$0xff] }
  0x28   :  { %1662 = vmatprep.mubr.msk.f32.mxu1 %vm2526_vm0, %v2525_v1  ;;  %v53_v4 = vld [vmem:[#allocation6] sm:$0xff]  ;;  %v2583_v5 = vpack.c.bf16 %v57_v3, %v54_v2  ;;  %v60_v7 = vld [vmem:[#allocation6 + $0x38] sm:$0xff]  ;;  %v59_v11 = vld [vmem:[#allocation6 + $0x30] sm:$0xff] }
  0x29   :  { %v2585_v9 = vpack.c.bf16 %v56_v6, %v53_v4  ;;  %v2587_v10 = vpack.c.bf16 %v63_v8, %v60_v7  ;;  %v62_v12 = vld [vmem:[#allocation6 + $0x48] sm:$0xff]  ;;  %v69_v14 = vld [vmem:[#allocation6 + $0x80] sm:$0xff]  ;;  %v68_v18 = vld [vmem:[#allocation6 + $0x78] sm:$0xff] }
  0x2a   :  { %v66_v13 = vld [vmem:[#allocation6 + $0x68] sm:$0xff]  ;;  %1911 = vmatprep.subr.bf16.mxu0 %v2583_v5  ;;  %v2591_v15 = vpack.c.bf16 %v62_v12, %v59_v11  ;;  %v65_v17 = vld [vmem:[#allocation6 + $0x60] sm:$0xff]  ;;  %v72_v19 = vld [vmem:[#allocation6 + $0x98] sm:$0xff] }
  0x2b   :  { %1913 = vmatpush1.bf16.msra.mxu0 %v2585_v9  ;;  %v2594_v16 = vpack.c.bf16 %v69_v14, %v66_v13  ;;  %v75_v20 = vld [vmem:[#allocation6 + $0xb0] sm:$0xff]  ;;  %v2597_v21 = vpack.c.bf16 %v68_v18, %v65_v17  ;;  %v74_v24 = vld [vmem:[#allocation6 + $0xa8] sm:$0xff]  ;;  %v81_v28 = vld [vmem:[#allocation6 + $0xe0] sm:$0xff] }
  0x2c   :  { %1915 = vmatprep.subr.bf16.mxu0 %v2587_v10  ;;  %v71_v22 = vld [vmem:[#allocation6 + $0x90] sm:$0xff]  ;;  %v2600_v23 = vpack.c.bf16 %v75_v20, %v72_v19  ;;  %v58_v26 = vld [vmem:[#allocation6 + $0x28] sm:$0xff]  ;;  %v61_v30 = vld [vmem:[#allocation6 + $0x40] sm:$0xff] }
  0x2d   :  { %v55_v25 = vld [vmem:[#allocation6 + $0x10] sm:$0xff]  ;;  %v78_v27 = vld [vmem:[#allocation6 + $0xc8] sm:$0xff]  ;;  %v64_v31 = vld [vmem:[#allocation6 + $0x58] sm:$0xff]  ;;  %v2605_v32 = vpack.c.bf16 %v74_v24, %v71_v22 }
  0x2e   :  { %v2602_v29 = vpack.c.bf16 %v58_v26, %v55_v25  ;;  %v77_v33 = vld [vmem:[#allocation6 + $0xc0] sm:$0xff]  ;;  %v2608_v34 = vpack.c.bf16 %v64_v31, %v61_v30  ;;  %v2611_v35 = vpack.c.bf16 %v81_v28, %v78_v27  ;;  %v80_v36 = vld [vmem:[#allocation6 + $0xd8] sm:$0xff]  ;;  %v67_v37 = vld [vmem:[#allocation6 + $0x70] sm:$0xff] }
  0x2f   :  { %1917 = vmatpush1.bf16.msra.mxu0 %v2591_v15  ;;  %v70_v38 = vld [vmem:[#allocation6 + $0x88] sm:$0xff]  ;;  %v84_v39 = vld [vmem:[#allocation6 + $0xf8] sm:$0xff]  ;;  %v87_v40 = vld [vmem:[#allocation6 + $0x110] sm:$0xff]  ;;  %v2615_v41 = vpack.c.bf16 %v80_v36, %v77_v33 }
  0x30   :  { %1919 = vmatprep.subr.bf16.mxu0 %v2594_v16  ;;  %1944 = vmatpush3.bf16.msra.mxu1 %v2602_v29  ;;  %v83_v42 = vld [vmem:[#allocation6 + $0xf0] sm:$0xff]  ;;  %v2618_v43 = vpack.c.bf16 %v70_v38, %v67_v37  ;;  %v2621_v44 = vpack.c.bf16 %v87_v40, %v84_v39  ;;  %v86_v45 = vld [vmem:[#allocation6 + $0x108] sm:$0xff]  ;;  %v73_v46 = vld [vmem:[#allocation6 + $0xa0] sm:$0xff] }
  0x31   :  { %1945 = vmatprep.subr.bf16.mxu1 %v2524_v0  ;;  %v76_v47 = vld [vmem:[#allocation6 + $0xb8] sm:$0xff]  ;;  %v90_v48 = vld [vmem:[#allocation6 + $0x128] sm:$0xff]  ;;  %v93_v49 = vld [vmem:[#allocation6 + $0x140] sm:$0xff]  ;;  %v2625_v50 = vpack.c.bf16 %v86_v45, %v83_v42 }
  0x32   :  { %v89_v51 = vld [vmem:[#allocation6 + $0x120] sm:$0xff]  ;;  %v2628_v52 = vpack.c.bf16 %v76_v47, %v73_v46  ;;  %v2631_v53 = vpack.c.bf16 %v93_v49, %v90_v48  ;;  %v92_v54 = vld [vmem:[#allocation6 + $0x138] sm:$0xff]  ;;  %v79_v55 = vld [vmem:[#allocation6 + $0xd0] sm:$0xff] }
  0x33   :  { %1921 = vmatpush1.bf16.msra.mxu0 %v2597_v21  ;;  %v82_v56 = vld [vmem:[#allocation6 + $0xe8] sm:$0xff]  ;;  %v96_v57 = vld [vmem:[#allocation6 + $0x158] sm:$0xff]  ;;  %v99_v58 = vld [vmem:[#allocation6 + $0x170] sm:$0xff]  ;;  %v2635_v59 = vpack.c.bf16 %v92_v54, %v89_v51 }
  0x34   :  { %1923 = vmatprep.subr.bf16.mxu0 %v2600_v23  ;;  %1947 = vmatpush3.bf16.msra.mxu1 %v2608_v34  ;;  %v95_v60 = vld [vmem:[#allocation6 + $0x150] sm:$0xff]  ;;  %v2638_v61 = vpack.c.bf16 %v82_v56, %v79_v55  ;;  %v2641_v62 = vpack.c.bf16 %v99_v58, %v96_v57  ;;  %v98_v63 = vld [vmem:[#allocation6 + $0x168] sm:$0xff]  ;;  %v85_v2 = vld [vmem:[#allocation6 + $0x100] sm:$0xff] }
  0x35   :  { %1948 = vmatprep.subr.bf16.mxu1 %v2524_v0  ;;  %v88_v3 = vld [vmem:[#allocation6 + $0x118] sm:$0xff]  ;;  %v2645_v4 = vpack.c.bf16 %v98_v63, %v95_v60  ;;  %v91_v7 = vld [vmem:[#allocation6 + $0x130] sm:$0xff]  ;;  %v94_v8 = vld [vmem:[#allocation6 + $0x148] sm:$0xff] }
  0x36   :  { %v2648_v6 = vpack.c.bf16 %v88_v3, %v85_v2  ;;  %v2656_v11 = vld [vmem:[%s2979_s3] sm:$0xff]  ;;  %v2659_v12 = vpack.c.bf16 %v94_v8, %v91_v7  ;;  %v100_v14 = vld [vmem:[#allocation6 + $0x178] sm:$0xff]  ;;  %v103_v22 = vld [vmem:[#allocation3 + $0x8] sm:$0xff] }
  0x37   :  { %1925 = vmatpush1.bf16.msra.mxu0 %v2605_v32  ;;  %v97_v13 = vld [vmem:[#allocation6 + $0x160] sm:$0xff]  ;;  %v104_v42 = vld [vmem:[#allocation3 + $0x10] sm:$0xff]  ;;  %v276_v56 = vld [vmem:[#allocation3 + $0x18] sm:$0xff] }
  0x38   :  { %1927 = vmatprep.subr.bf16.mxu0 %v2611_v35  ;;  %1950 = vmatpush3.bf16.msra.mxu1 %v2618_v43  ;;  %v2665_v17 = vpack.c.bf16 %v100_v14, %v97_v13  ;;  %v102_v18 = vld [vmem:[#allocation3] sm:$0xff] }
  0x39   :  { %1951 = vmatprep.subr.bf16.mxu1 %v2524_v0  ;;  %v2709_v37 = vld [vmem:[%s2978_s2] ss:$0 sm:$0xff]  ;;  %s2527_s2 = smov [#allocation8]  }
  0x3a   :  { %v277_v63 = vld [vmem:[#allocation3 + $0x20] sm:$0xff]  ;;  %s1464_s16 = sshll.u32 %s2527_s2, 4  ;;  %s1465_s16 = int_to_ptr.vmem [resolvable:$true] %s1464_s16 }
  0x3b   :  { %1929 = vmatpush1.bf16.msra.mxu0 %v2615_v41  ;;  %s2492_s17 = scalar_lea.vmem %s1465_s16, 1024  ;;  %p2497_p3 = scmp.lt.s32.totalorder %s1465_s16, %s1465_s16 }
  0x3c   :  { %1931 = vmatprep.subr.bf16.mxu0 %v2621_v44  ;;  %1953 = vmatpush3.bf16.msra.mxu1 %v2628_v52  ;;  %p2493_p2 = scmp.ne.s32.totalorder %s1465_s16, %s2492_s17  ;;  %p2498_p4 = scmp.lt.s32.totalorder %s2492_s17, %s2492_s17 }
  0x3d   :  { %1954 = vmatprep.subr.bf16.mxu1 %v2524_v0 }
  0x3e   :  { %p2499_p5 = por %p2498_p4, %p2497_p3 }
  0x3f   :  { %1933 = vmatpush1.bf16.msra.mxu0 %v2625_v50 }
  0x40   :  { %1935 = vmatprep.subr.bf16.mxu0 %v2631_v53  ;;  %1956 = vmatpush3.bf16.msra.mxu1 %v2638_v61  ;;  %p2500_p6 = pnand %p2499_p5, %p2493_p2 }
  0x41   :  { %1957 = vmatprep.subr.bf16.mxu1 %v2524_v0 }
  0x43   :  { %1937 = vmatpush1.bf16.msra.mxu0 %v2635_v59 }
  0x44   :  { %1939 = vmatprep.subr.bf16.mxu0 %v2641_v62  ;;  %1959 = vmatpush3.bf16.msra.mxu1 %v2648_v6 }
  0x45   :  { %1960 = vmatprep.subr.bf16.mxu1 %v2524_v0 }
  0x47   :  { %1941 = vmatpush1.bf16.msra.mxu0 %v2645_v4 }
  0x48   :  { %1967 = vmatprep.subr.bf16.mxu0 %v2583_v5  ;;  %1962 = vmatpush3.bf16.msra.mxu1 %v2659_v12 }
  0x49   :  { %1963 = vmatprep.subr.bf16.mxu1 %v2524_v0 }
  0x4a   :  { %170 = vmatmul.mubr.f32.vlgmr.msra.gmra.mrb[0].mxu0 %v2656_v11 }
  0x4b   :  { %1969 = vmatpush1.bf16.msra.mxu0 %v2585_v9  ;;  %343 = vmatprep.mubr.f32.mxu0 %v2525_v1 }
  0x4c   :  { %1971 = vmatprep.subr.bf16.mxu0 %v2587_v10  ;;  %1965 = vmatpush3.bf16.msra.mxu1 %v2665_v17 }
  0x4d   :  { %1998 = vmatprep.subr.bf16.mxu1 %v2524_v0 }
  0x4f   :  { %1973 = vmatpush1.bf16.msra.mxu0 %v2591_v15  ;;  %1663 = vmatmul.mubr.f32.vlgmr.msra.gmra.mrb[0].mxu1 %v2656_v11 }
  0x50   :  { %1975 = vmatprep.subr.bf16.mxu0 %v2594_v16  ;;  %2000 = vmatpush3.bf16.msra.mxu1 %v2602_v29 }
  0x51   :  { %2001 = vmatprep.subr.bf16.mxu1 %v2524_v0  ;;  %1697 = vmatprep.mubr.msk.f32.mxu1 %vm2526_vm0, %v2525_v1 }
  0x53   :  { %1977 = vmatpush1.bf16.msra.mxu0 %v2597_v21 }
  0x54   :  { %1979 = vmatprep.subr.bf16.mxu0 %v2600_v23  ;;  %2003 = vmatpush3.bf16.msra.mxu1 %v2608_v34 }
  0x55   :  { %2004 = vmatprep.subr.bf16.mxu1 %v2524_v0 }
  0x57   :  { %1981 = vmatpush1.bf16.msra.mxu0 %v2605_v32 }
  0x58   :  { %1983 = vmatprep.subr.bf16.mxu0 %v2611_v35  ;;  %2006 = vmatpush3.bf16.msra.mxu1 %v2618_v43 }
  0x59   :  { %2007 = vmatprep.subr.bf16.mxu1 %v2524_v0 }
  0x5b   :  { %1985 = vmatpush1.bf16.msra.mxu0 %v2615_v41 }
  0x5c   :  { %1987 = vmatprep.subr.bf16.mxu0 %v2621_v44  ;;  %2009 = vmatpush3.bf16.msra.mxu1 %v2628_v52 }
  0x5d   :  { %2010 = vmatprep.subr.bf16.mxu1 %v2524_v0 }
  0x5f   :  { %1989 = vmatpush1.bf16.msra.mxu0 %v2625_v50 }
  0x60   :  { %1991 = vmatprep.subr.bf16.mxu0 %v2631_v53  ;;  %2012 = vmatpush3.bf16.msra.mxu1 %v2638_v61 }
  0x61   :  { %2013 = vmatprep.subr.bf16.mxu1 %v2524_v0 }
  0x63   :  { %1993 = vmatpush1.bf16.msra.mxu0 %v2635_v59 }
  0x64   :  { %1995 = vmatprep.subr.bf16.mxu0 %v2641_v62  ;;  %2015 = vmatpush3.bf16.msra.mxu1 %v2648_v6 }
  0x65   :  { %2016 = vmatprep.subr.bf16.mxu1 %v2524_v0 }
  0x67   :  { %1997 = vmatpush1.bf16.msra.mxu0 %v2645_v4 }
  0x68   :  { %2023 = vmatprep.subr.bf16.mxu0 %v2583_v5  ;;  %2018 = vmatpush3.bf16.msra.mxu1 %v2659_v12 }
  0x69   :  { %2019 = vmatprep.subr.bf16.mxu1 %v2524_v0 }
  0x6c   :  { %2021 = vmatpush3.bf16.msra.mxu1 %v2665_v17 }
  0x6d   :  { %2054 = vmatprep.subr.bf16.mxu1 %v2524_v0 }
 0x11d   :  { %v171_v19 = vpop.f32.mrb[0].mxu0 }
 0x11e   :  { %v246_v20 = vadd.f32 %v171_v19, %v102_v18  ;;  %v173_v24 = vpop.f32.mrb[1].mxu0 }
 0x11f   :  { %v253_v26 = vadd.f32 %v173_v24, %v103_v22  ;;  %v278_v24 = vld [vmem:[#allocation3 + $0x28] sm:$0xff] }
 0x120   :  { %v1477_v25 = vmul.f32 -1.442695, %v246_v20 }
 0x121   :  { %v1478_v27 = vmul.f32 -1.442695, %v253_v26 }
 0x122   :  { %2368 = vpow2.f32 %v1477_v25  ;;  %v242_v28 = vpop.f32.mrb[0].mxu1 }
 0x123   :  { %v1664_v30 = vpop.f32.mrb[1].mxu1  ;;  %2370 = vpow2.f32 %v1478_v27  ;;  %v266_v39 = vadd.f32 %v2709_v37, %v242_v28 }
 0x12c   :  { %v2369_v31 = vpop.eup %2368 }
 0x12d   :  { %v250_v33 = vadd.f32 1.0, %v2369_v31  ;;  %v2371_v36 = vpop.eup %2370 }
 0x12e   :  { %v257_v38 = vadd.f32 1.0, %v2371_v36 }
 0x12f   :  { %2372 = vrcp.f32 %v250_v33 }
 0x130   :  { %2374 = vrcp.f32 %v257_v38  ;;  %v445_v38 = vld [vmem:[#allocation3 + $0x30] sm:$0xff] }
 0x139   :  { %v2373_v40 = vpop.eup %2372 }
 0x13a   :  { %v267_v45 = vmul.f32 %v2373_v40, %v266_v39  ;;  %v2375_v47 = vpop.eup %2374 }
 0x13b   :  { %v270_v48 = vsub.f32 1.0, %v2375_v47  ;;  %v272_v54 = vmul.f32 %v2375_v47, %v2656_v11 }
 0x13c   :  { %v268_v46 = vadd.f32 %v267_v45, %v104_v42  ;;  %v446_v45 = vld [vmem:[#allocation3 + $0x38] sm:$0xff] }
 0x13e   :  { %2376 = vtanh.f32 %v268_v46 }
 0x148   :  { %v2377_v49 = vpop.eup %2376 }
 0x149   :  { %v271_v51 = vmul.f32 %v2377_v49, %v270_v48 }
 0x14b   :  { %v2713_v55 = vadd.f32 %v272_v54, %v271_v51 }
 0x14d   :  { %274 = vst [vmem:[#allocation8] sm:$0xff] %v2713_v55  ;;  %344 = vmatmul.mubr.f32.vlgmr.msra.gmra.mrb[2].mxu0 %v2713_v55  ;;  %1698 = vmatmul.mubr.f32.vlgmr.msra.gmra.mrb[2].mxu1 %v2713_v55 }
 0x14e   :  { %2025 = vmatpush1.bf16.msra.mxu0 %v2585_v9  ;;  %2056 = vmatpush3.bf16.msra.mxu1 %v2602_v29 }
 0x14f   :  { %2027 = vmatprep.subr.bf16.mxu0 %v2587_v10  ;;  %2057 = vmatprep.subr.bf16.mxu1 %v2524_v0 }
 0x150   :  { %512 = vmatprep.mubr.f32.mxu0 %v2525_v1  ;;  %1732 = vmatprep.mubr.msk.f32.mxu1 %vm2526_vm0, %v2525_v1 }
 0x152   :  { %2029 = vmatpush1.bf16.msra.mxu0 %v2591_v15  ;;  %2059 = vmatpush3.bf16.msra.mxu1 %v2608_v34 }
 0x153   :  { %2031 = vmatprep.subr.bf16.mxu0 %v2594_v16  ;;  %2060 = vmatprep.subr.bf16.mxu1 %v2524_v0 }
 0x156   :  { %2033 = vmatpush1.bf16.msra.mxu0 %v2597_v21  ;;  %2062 = vmatpush3.bf16.msra.mxu1 %v2618_v43 }
 0x157   :  { %2035 = vmatprep.subr.bf16.mxu0 %v2600_v23  ;;  %2063 = vmatprep.subr.bf16.mxu1 %v2524_v0 }
 0x15a   :  { %2037 = vmatpush1.bf16.msra.mxu0 %v2605_v32  ;;  %2065 = vmatpush3.bf16.msra.mxu1 %v2628_v52 }
 0x15b   :  { %2039 = vmatprep.subr.bf16.mxu0 %v2611_v35  ;;  %2066 = vmatprep.subr.bf16.mxu1 %v2524_v0 }
 0x15e   :  { %2041 = vmatpush1.bf16.msra.mxu0 %v2615_v41  ;;  %2068 = vmatpush3.bf16.msra.mxu1 %v2638_v61 }
 0x15f   :  { %2043 = vmatprep.subr.bf16.mxu0 %v2621_v44  ;;  %2069 = vmatprep.subr.bf16.mxu1 %v2524_v0 }
 0x162   :  { %2045 = vmatpush1.bf16.msra.mxu0 %v2625_v50  ;;  %2071 = vmatpush3.bf16.msra.mxu1 %v2648_v6 }
 0x163   :  { %2047 = vmatprep.subr.bf16.mxu0 %v2631_v53  ;;  %2072 = vmatprep.subr.bf16.mxu1 %v2524_v0 }
 0x166   :  { %2049 = vmatpush1.bf16.msra.mxu0 %v2635_v59  ;;  %2074 = vmatpush3.bf16.msra.mxu1 %v2659_v12 }
 0x167   :  { %2051 = vmatprep.subr.bf16.mxu0 %v2641_v62  ;;  %2075 = vmatprep.subr.bf16.mxu1 %v2524_v0 }
 0x16a   :  { %2053 = vmatpush1.bf16.msra.mxu0 %v2645_v4  ;;  %2077 = vmatpush3.bf16.msra.mxu1 %v2665_v17 }
 0x16b   :  { %2079 = vmatprep.subr.bf16.mxu0 %v2583_v5  ;;  %2110 = vmatprep.subr.bf16.mxu1 %v2524_v0 }
 0x220   :  { %v345_v57 = vpop.f32.mrb[2].mxu0  ;;  %v416_v58 = vpop.f32.mrb[2].mxu1 }
 0x221   :  { %v420_v60 = vadd.f32 %v345_v57, %v276_v56  ;;  %v347_v2 = vpop.f32.mrb[3].mxu0  ;;  %v1699_v3 = vpop.f32.mrb[3].mxu1  ;;  %v434_v20 = vadd.f32 %v2709_v37, %v416_v58 }
 0x222   :  { %v427_v8 = vadd.f32 %v347_v2, %v277_v63  ;;  %v447_v63 = vld [vmem:[#allocation3 + $0x40] sm:$0xff] }
 0x223   :  { %v1480_v7 = vmul.f32 -1.442695, %v420_v60 }
 0x224   :  { %v1481_v11 = vmul.f32 -1.442695, %v427_v8 }
 0x225   :  { %2378 = vpow2.f32 %v1480_v7 }
 0x226   :  { %2380 = vpow2.f32 %v1481_v11 }
 0x22f   :  { %v2379_v13 = vpop.eup %2378 }
 0x230   :  { %v424_v14 = vadd.f32 1.0, %v2379_v13  ;;  %v2381_v18 = vpop.eup %2380 }
 0x231   :  { %v431_v19 = vadd.f32 1.0, %v2381_v18 }
 0x232   :  { %2382 = vrcp.f32 %v424_v14 }
 0x233   :  { %2384 = vrcp.f32 %v431_v19  ;;  %v614_v19 = vld [vmem:[#allocation3 + $0x48] sm:$0xff] }
 0x23c   :  { %v2383_v22 = vpop.eup %2382 }
 0x23d   :  { %v435_v25 = vmul.f32 %v2383_v22, %v434_v20  ;;  %v2385_v27 = vpop.eup %2384 }
 0x23e   :  { %v438_v28 = vsub.f32 1.0, %v2385_v27  ;;  %v440_v33 = vmul.f32 %v2385_v27, %v2713_v55 }
 0x23f   :  { %v436_v26 = vadd.f32 %v435_v25, %v278_v24  ;;  %v615_v25 = vld [vmem:[#allocation3 + $0x50] sm:$0xff] }
 0x241   :  { %2386 = vtanh.f32 %v436_v26 }
 0x24b   :  { %v2387_v30 = vpop.eup %2386 }
 0x24c   :  { %v439_v31 = vmul.f32 %v2387_v30, %v438_v28 }
 0x24e   :  { %v2755_v36 = vadd.f32 %v440_v33, %v439_v31 }
 0x250   :  { %443 = vst [vmem:[#allocation8 + $0x8] sm:$0xff] %v2755_v36  ;;  %513 = vmatmul.mubr.f32.vlgmr.msra.gmra.mrb[4].mxu0 %v2755_v36  ;;  %1733 = vmatmul.mubr.f32.vlgmr.msra.gmra.mrb[4].mxu1 %v2755_v36 }
 0x251   :  { %2081 = vmatpush1.bf16.msra.mxu0 %v2585_v9  ;;  %2112 = vmatpush3.bf16.msra.mxu1 %v2602_v29 }
 0x252   :  { %2083 = vmatprep.subr.bf16.mxu0 %v2587_v10  ;;  %2113 = vmatprep.subr.bf16.mxu1 %v2524_v0 }
 0x253   :  { %681 = vmatprep.mubr.f32.mxu0 %v2525_v1  ;;  %1767 = vmatprep.mubr.msk.f32.mxu1 %vm2526_vm0, %v2525_v1 }
 0x255   :  { %2085 = vmatpush1.bf16.msra.mxu0 %v2591_v15  ;;  %2115 = vmatpush3.bf16.msra.mxu1 %v2608_v34 }
 0x256   :  { %2087 = vmatprep.subr.bf16.mxu0 %v2594_v16  ;;  %2116 = vmatprep.subr.bf16.mxu1 %v2524_v0 }
 0x259   :  { %2089 = vmatpush1.bf16.msra.mxu0 %v2597_v21  ;;  %2118 = vmatpush3.bf16.msra.mxu1 %v2618_v43 }
 0x25a   :  { %2091 = vmatprep.subr.bf16.mxu0 %v2600_v23  ;;  %2119 = vmatprep.subr.bf16.mxu1 %v2524_v0 }
 0x25d   :  { %2093 = vmatpush1.bf16.msra.mxu0 %v2605_v32  ;;  %2121 = vmatpush3.bf16.msra.mxu1 %v2628_v52 }
 0x25e   :  { %2095 = vmatprep.subr.bf16.mxu0 %v2611_v35  ;;  %2122 = vmatprep.subr.bf16.mxu1 %v2524_v0 }
 0x261   :  { %2097 = vmatpush1.bf16.msra.mxu0 %v2615_v41  ;;  %2124 = vmatpush3.bf16.msra.mxu1 %v2638_v61 }
 0x262   :  { %2099 = vmatprep.subr.bf16.mxu0 %v2621_v44  ;;  %2125 = vmatprep.subr.bf16.mxu1 %v2524_v0 }
 0x265   :  { %2101 = vmatpush1.bf16.msra.mxu0 %v2625_v50  ;;  %2127 = vmatpush3.bf16.msra.mxu1 %v2648_v6 }
 0x266   :  { %2103 = vmatprep.subr.bf16.mxu0 %v2631_v53  ;;  %2128 = vmatprep.subr.bf16.mxu1 %v2524_v0 }
 0x269   :  { %2105 = vmatpush1.bf16.msra.mxu0 %v2635_v59  ;;  %2130 = vmatpush3.bf16.msra.mxu1 %v2659_v12 }
 0x26a   :  { %2107 = vmatprep.subr.bf16.mxu0 %v2641_v62  ;;  %2131 = vmatprep.subr.bf16.mxu1 %v2524_v0 }
 0x26d   :  { %2109 = vmatpush1.bf16.msra.mxu0 %v2645_v4  ;;  %2133 = vmatpush3.bf16.msra.mxu1 %v2665_v17 }
 0x26e   :  { %2135 = vmatprep.subr.bf16.mxu0 %v2583_v5  ;;  %2166 = vmatprep.subr.bf16.mxu1 %v2524_v0 }
 0x323   :  { %v514_v39 = vpop.f32.mrb[4].mxu0  ;;  %v585_v40 = vpop.f32.mrb[4].mxu1 }
 0x324   :  { %v589_v42 = vadd.f32 %v514_v39, %v445_v38  ;;  %v516_v46 = vpop.f32.mrb[5].mxu0  ;;  %v1734_v47 = vpop.f32.mrb[5].mxu1  ;;  %v603_v58 = vadd.f32 %v2709_v37, %v585_v40 }
 0x325   :  { %v596_v49 = vadd.f32 %v516_v46, %v446_v45  ;;  %v616_v45 = vld [vmem:[#allocation3 + $0x58] sm:$0xff] }
 0x326   :  { %v1482_v48 = vmul.f32 -1.442695, %v589_v42 }
 0x327   :  { %v1483_v51 = vmul.f32 -1.442695, %v596_v49 }
 0x328   :  { %2388 = vpow2.f32 %v1482_v48 }
 0x329   :  { %2390 = vpow2.f32 %v1483_v51 }
 0x332   :  { %v2389_v54 = vpop.eup %2388 }
 0x333   :  { %v593_v55 = vadd.f32 1.0, %v2389_v54  ;;  %v2391_v56 = vpop.eup %2390 }
 0x334   :  { %v600_v57 = vadd.f32 1.0, %v2391_v56 }
 0x335   :  { %2392 = vrcp.f32 %v593_v55 }
 0x336   :  { %2394 = vrcp.f32 %v600_v57  ;;  %v783_v57 = vld [vmem:[#allocation3 + $0x60] sm:$0xff] }
 0x33f   :  { %v2393_v60 = vpop.eup %2392 }
 0x340   :  { %v604_v2 = vmul.f32 %v2393_v60, %v603_v58  ;;  %v2395_v7 = vpop.eup %2394 }
 0x341   :  { %v607_v8 = vsub.f32 1.0, %v2395_v7  ;;  %v609_v14 = vmul.f32 %v2395_v7, %v2755_v36 }
 0x342   :  { %v605_v3 = vadd.f32 %v604_v2, %v447_v63  ;;  %v784_v2 = vld [vmem:[#allocation3 + $0x68] sm:$0xff] }
 0x344   :  { %2396 = vtanh.f32 %v605_v3 }
 0x34e   :  { %v2397_v11 = vpop.eup %2396 }
 0x34f   :  { %v608_v13 = vmul.f32 %v2397_v11, %v607_v8 }
 0x351   :  { %v2797_v18 = vadd.f32 %v609_v14, %v608_v13 }
 0x353   :  { %612 = vst [vmem:[#allocation8 + $0x10] sm:$0xff] %v2797_v18  ;;  %682 = vmatmul.mubr.f32.vlgmr.msra.gmra.mrb[6].mxu0 %v2797_v18  ;;  %1768 = vmatmul.mubr.f32.vlgmr.msra.gmra.mrb[6].mxu1 %v2797_v18 }
 0x354   :  { %2137 = vmatpush1.bf16.msra.mxu0 %v2585_v9  ;;  %2168 = vmatpush3.bf16.msra.mxu1 %v2602_v29 }
 0x355   :  { %2139 = vmatprep.subr.bf16.mxu0 %v2587_v10  ;;  %2169 = vmatprep.subr.bf16.mxu1 %v2524_v0 }
 0x356   :  { %850 = vmatprep.mubr.f32.mxu0 %v2525_v1  ;;  %1802 = vmatprep.mubr.msk.f32.mxu1 %vm2526_vm0, %v2525_v1 }
 0x358   :  { %2141 = vmatpush1.bf16.msra.mxu0 %v2591_v15  ;;  %2171 = vmatpush3.bf16.msra.mxu1 %v2608_v34 }
 0x359   :  { %2143 = vmatprep.subr.bf16.mxu0 %v2594_v16  ;;  %2172 = vmatprep.subr.bf16.mxu1 %v2524_v0 }
 0x35c   :  { %2145 = vmatpush1.bf16.msra.mxu0 %v2597_v21  ;;  %2174 = vmatpush3.bf16.msra.mxu1 %v2618_v43 }
 0x35d   :  { %2147 = vmatprep.subr.bf16.mxu0 %v2600_v23  ;;  %2175 = vmatprep.subr.bf16.mxu1 %v2524_v0 }
 0x360   :  { %2149 = vmatpush1.bf16.msra.mxu0 %v2605_v32  ;;  %2177 = vmatpush3.bf16.msra.mxu1 %v2628_v52 }
 0x361   :  { %2151 = vmatprep.subr.bf16.mxu0 %v2611_v35  ;;  %2178 = vmatprep.subr.bf16.mxu1 %v2524_v0 }
 0x364   :  { %2153 = vmatpush1.bf16.msra.mxu0 %v2615_v41  ;;  %2180 = vmatpush3.bf16.msra.mxu1 %v2638_v61 }
 0x365   :  { %2155 = vmatprep.subr.bf16.mxu0 %v2621_v44  ;;  %2181 = vmatprep.subr.bf16.mxu1 %v2524_v0 }
 0x368   :  { %2157 = vmatpush1.bf16.msra.mxu0 %v2625_v50  ;;  %2183 = vmatpush3.bf16.msra.mxu1 %v2648_v6 }
 0x369   :  { %2159 = vmatprep.subr.bf16.mxu0 %v2631_v53  ;;  %2184 = vmatprep.subr.bf16.mxu1 %v2524_v0 }
 0x36c   :  { %2161 = vmatpush1.bf16.msra.mxu0 %v2635_v59  ;;  %2186 = vmatpush3.bf16.msra.mxu1 %v2659_v12 }
 0x36d   :  { %2163 = vmatprep.subr.bf16.mxu0 %v2641_v62  ;;  %2187 = vmatprep.subr.bf16.mxu1 %v2524_v0 }
 0x370   :  { %2165 = vmatpush1.bf16.msra.mxu0 %v2645_v4  ;;  %2189 = vmatpush3.bf16.msra.mxu1 %v2665_v17 }
 0x371   :  { %2191 = vmatprep.subr.bf16.mxu0 %v2583_v5  ;;  %2222 = vmatprep.subr.bf16.mxu1 %v2524_v0 }
 0x426   :  { %v683_v20 = vpop.f32.mrb[6].mxu0  ;;  %v754_v22 = vpop.f32.mrb[6].mxu1 }
 0x427   :  { %v758_v24 = vadd.f32 %v683_v20, %v614_v19  ;;  %v685_v26 = vpop.f32.mrb[7].mxu0  ;;  %v1769_v27 = vpop.f32.mrb[7].mxu1  ;;  %v772_v40 = vadd.f32 %v2709_v37, %v754_v22 }
 0x428   :  { %v765_v30 = vadd.f32 %v685_v26, %v615_v25  ;;  %v785_v25 = vld [vmem:[#allocation3 + $0x70] sm:$0xff] }
 0x429   :  { %v1484_v28 = vmul.f32 -1.442695, %v758_v24 }
 0x42a   :  { %v1485_v31 = vmul.f32 -1.442695, %v765_v30 }
 0x42b   :  { %2398 = vpow2.f32 %v1484_v28 }
 0x42c   :  { %2400 = vpow2.f32 %v1485_v31 }
 0x435   :  { %v2399_v33 = vpop.eup %2398 }
 0x436   :  { %v762_v36 = vadd.f32 1.0, %v2399_v33  ;;  %v2401_v38 = vpop.eup %2400 }
 0x437   :  { %v769_v39 = vadd.f32 1.0, %v2401_v38 }
 0x438   :  { %2402 = vrcp.f32 %v762_v36 }
 0x439   :  { %2404 = vrcp.f32 %v769_v39  ;;  %v952_v39 = vld [vmem:[#allocation3 + $0x78] sm:$0xff] }
 0x442   :  { %v2403_v42 = vpop.eup %2402 }
 0x443   :  { %v773_v46 = vmul.f32 %v2403_v42, %v772_v40  ;;  %v2405_v48 = vpop.eup %2404 }
 0x444   :  { %v776_v49 = vsub.f32 1.0, %v2405_v48  ;;  %v778_v55 = vmul.f32 %v2405_v48, %v2797_v18 }
 0x445   :  { %v774_v47 = vadd.f32 %v773_v46, %v616_v45  ;;  %v953_v46 = vld [vmem:[#allocation3 + $0x80] sm:$0xff] }
 0x447   :  { %2406 = vtanh.f32 %v774_v47 }
 0x451   :  { %v2407_v51 = vpop.eup %2406 }
 0x452   :  { %v777_v54 = vmul.f32 %v2407_v51, %v776_v49 }
 0x454   :  { %v2839_v56 = vadd.f32 %v778_v55, %v777_v54 }
 0x456   :  { %781 = vst [vmem:[#allocation8 + $0x18] sm:$0xff] %v2839_v56  ;;  %851 = vmatmul.mubr.f32.vlgmr.msra.gmra.mrb[8].mxu0 %v2839_v56  ;;  %1803 = vmatmul.mubr.f32.vlgmr.msra.gmra.mrb[8].mxu1 %v2839_v56 }
 0x457   :  { %2193 = vmatpush1.bf16.msra.mxu0 %v2585_v9  ;;  %2224 = vmatpush3.bf16.msra.mxu1 %v2602_v29 }
 0x458   :  { %2195 = vmatprep.subr.bf16.mxu0 %v2587_v10  ;;  %2225 = vmatprep.subr.bf16.mxu1 %v2524_v0 }
 0x459   :  { %1019 = vmatprep.mubr.f32.mxu0 %v2525_v1  ;;  %1837 = vmatprep.mubr.msk.f32.mxu1 %vm2526_vm0, %v2525_v1 }
 0x45b   :  { %2197 = vmatpush1.bf16.msra.mxu0 %v2591_v15  ;;  %2227 = vmatpush3.bf16.msra.mxu1 %v2608_v34 }
 0x45c   :  { %2199 = vmatprep.subr.bf16.mxu0 %v2594_v16  ;;  %2228 = vmatprep.subr.bf16.mxu1 %v2524_v0 }
 0x45f   :  { %2201 = vmatpush1.bf16.msra.mxu0 %v2597_v21  ;;  %2230 = vmatpush3.bf16.msra.mxu1 %v2618_v43 }
 0x460   :  { %2203 = vmatprep.subr.bf16.mxu0 %v2600_v23  ;;  %2231 = vmatprep.subr.bf16.mxu1 %v2524_v0 }
 0x463   :  { %2205 = vmatpush1.bf16.msra.mxu0 %v2605_v32  ;;  %2233 = vmatpush3.bf16.msra.mxu1 %v2628_v52 }
 0x464   :  { %2207 = vmatprep.subr.bf16.mxu0 %v2611_v35  ;;  %2234 = vmatprep.subr.bf16.mxu1 %v2524_v0 }
 0x467   :  { %2209 = vmatpush1.bf16.msra.mxu0 %v2615_v41  ;;  %2236 = vmatpush3.bf16.msra.mxu1 %v2638_v61 }
 0x468   :  { %2211 = vmatprep.subr.bf16.mxu0 %v2621_v44  ;;  %2237 = vmatprep.subr.bf16.mxu1 %v2524_v0 }
 0x46b   :  { %2213 = vmatpush1.bf16.msra.mxu0 %v2625_v50  ;;  %2239 = vmatpush3.bf16.msra.mxu1 %v2648_v6 }
 0x46c   :  { %2215 = vmatprep.subr.bf16.mxu0 %v2631_v53  ;;  %2240 = vmatprep.subr.bf16.mxu1 %v2524_v0 }
 0x46f   :  { %2217 = vmatpush1.bf16.msra.mxu0 %v2635_v59  ;;  %2242 = vmatpush3.bf16.msra.mxu1 %v2659_v12 }
 0x470   :  { %2219 = vmatprep.subr.bf16.mxu0 %v2641_v62  ;;  %2243 = vmatprep.subr.bf16.mxu1 %v2524_v0 }
 0x473   :  { %2221 = vmatpush1.bf16.msra.mxu0 %v2645_v4  ;;  %2245 = vmatpush3.bf16.msra.mxu1 %v2665_v17 }
 0x474   :  { %2247 = vmatprep.subr.bf16.mxu0 %v2583_v5  ;;  %2278 = vmatprep.subr.bf16.mxu1 %v2524_v0 }
 0x529   :  { %v852_v58 = vpop.f32.mrb[8].mxu0  ;;  %v923_v60 = vpop.f32.mrb[8].mxu1 }
 0x52a   :  { %v927_v63 = vadd.f32 %v852_v58, %v783_v57  ;;  %v854_v3 = vpop.f32.mrb[9].mxu0  ;;  %v1804_v7 = vpop.f32.mrb[9].mxu1  ;;  %v941_v22 = vadd.f32 %v2709_v37, %v923_v60 }
 0x52b   :  { %v934_v11 = vadd.f32 %v854_v3, %v784_v2 }
 0x52c   :  { %v1486_v8 = vmul.f32 -1.442695, %v927_v63  ;;  %v954_v63 = vld [vmem:[#allocation3 + $0x88] sm:$0xff] }
 0x52d   :  { %v1487_v13 = vmul.f32 -1.442695, %v934_v11 }
 0x52e   :  { %2408 = vpow2.f32 %v1486_v8 }
 0x52f   :  { %2410 = vpow2.f32 %v1487_v13 }
 0x538   :  { %v2409_v14 = vpop.eup %2408 }
 0x539   :  { %v931_v18 = vadd.f32 1.0, %v2409_v14  ;;  %v2411_v19 = vpop.eup %2410 }
 0x53a   :  { %v938_v20 = vadd.f32 1.0, %v2411_v19  ;;  %v1290_v19 = vld [vmem:[#allocation3 + $0xa8] sm:$0xff] }
 0x53b   :  { %2412 = vrcp.f32 %v931_v18 }
 0x53c   :  { %2414 = vrcp.f32 %v938_v20 }
 0x545   :  { %v2413_v24 = vpop.eup %2412 }
 0x546   :  { %v942_v26 = vmul.f32 %v2413_v24, %v941_v22  ;;  %v2415_v28 = vpop.eup %2414 }
 0x547   :  { %v945_v30 = vsub.f32 1.0, %v2415_v28  ;;  %v947_v36 = vmul.f32 %v2415_v28, %v2839_v56 }
 0x548   :  { %v943_v27 = vadd.f32 %v942_v26, %v785_v25  ;;  %v1291_v25 = vld [vmem:[#allocation3 + $0xb0] sm:$0xff] }
 0x54a   :  { %2416 = vtanh.f32 %v943_v27 }
 0x554   :  { %v2417_v31 = vpop.eup %2416 }
 0x555   :  { %v946_v33 = vmul.f32 %v2417_v31, %v945_v30 }
 0x557   :  { %v2881_v38 = vadd.f32 %v947_v36, %v946_v33 }
 0x559   :  { %950 = vst [vmem:[#allocation8 + $0x20] sm:$0xff] %v2881_v38  ;;  %1020 = vmatmul.mubr.f32.vlgmr.msra.gmra.mrb[10].mxu0 %v2881_v38  ;;  %1838 = vmatmul.mubr.f32.vlgmr.msra.gmra.mrb[10].mxu1 %v2881_v38 }
 0x55a   :  { %2249 = vmatpush1.bf16.msra.mxu0 %v2585_v9  ;;  %2280 = vmatpush3.bf16.msra.mxu1 %v2602_v29 }
 0x55b   :  { %2251 = vmatprep.subr.bf16.mxu0 %v2587_v10  ;;  %2281 = vmatprep.subr.bf16.mxu1 %v2524_v0 }
 0x55c   :  { %1188 = vmatprep.mubr.f32.mxu0 %v2525_v1  ;;  %1872 = vmatprep.mubr.msk.f32.mxu1 %vm2526_vm0, %v2525_v1 }
 0x55e   :  { %2253 = vmatpush1.bf16.msra.mxu0 %v2591_v15  ;;  %2283 = vmatpush3.bf16.msra.mxu1 %v2608_v34 }
 0x55f   :  { %2255 = vmatprep.subr.bf16.mxu0 %v2594_v16  ;;  %2284 = vmatprep.subr.bf16.mxu1 %v2524_v0 }
 0x562   :  { %2257 = vmatpush1.bf16.msra.mxu0 %v2597_v21  ;;  %2286 = vmatpush3.bf16.msra.mxu1 %v2618_v43 }
 0x563   :  { %2259 = vmatprep.subr.bf16.mxu0 %v2600_v23  ;;  %2287 = vmatprep.subr.bf16.mxu1 %v2524_v0 }
 0x566   :  { %2261 = vmatpush1.bf16.msra.mxu0 %v2605_v32  ;;  %2289 = vmatpush3.bf16.msra.mxu1 %v2628_v52 }
 0x567   :  { %2263 = vmatprep.subr.bf16.mxu0 %v2611_v35  ;;  %2290 = vmatprep.subr.bf16.mxu1 %v2524_v0 }
 0x56a   :  { %2265 = vmatpush1.bf16.msra.mxu0 %v2615_v41  ;;  %2292 = vmatpush3.bf16.msra.mxu1 %v2638_v61 }
 0x56b   :  { %2267 = vmatprep.subr.bf16.mxu0 %v2621_v44  ;;  %2293 = vmatprep.subr.bf16.mxu1 %v2524_v0 }
 0x56e   :  { %2269 = vmatpush1.bf16.msra.mxu0 %v2625_v50  ;;  %2295 = vmatpush3.bf16.msra.mxu1 %v2648_v6 }
 0x56f   :  { %2271 = vmatprep.subr.bf16.mxu0 %v2631_v53  ;;  %2296 = vmatprep.subr.bf16.mxu1 %v2524_v0 }
 0x572   :  { %2273 = vmatpush1.bf16.msra.mxu0 %v2635_v59  ;;  %2298 = vmatpush3.bf16.msra.mxu1 %v2659_v12 }
 0x573   :  { %2275 = vmatprep.subr.bf16.mxu0 %v2641_v62  ;;  %2299 = vmatprep.subr.bf16.mxu1 %v2524_v0 }
 0x576   :  { %2277 = vmatpush1.bf16.msra.mxu0 %v2645_v4  ;;  %2301 = vmatpush3.bf16.msra.mxu1 %v2665_v17 }
 0x577   :  { %2303 = vmatprep.subr.bf16.mxu0 %v2583_v5  ;;  %2334 = vmatprep.subr.bf16.mxu1 %v2524_v0 }
 0x62c   :  { %v1021_v40 = vpop.f32.mrb[10].mxu0  ;;  %v1092_v42 = vpop.f32.mrb[10].mxu1 }
 0x62d   :  { %v1096_v45 = vadd.f32 %v1021_v40, %v952_v39  ;;  %v1023_v47 = vpop.f32.mrb[11].mxu0  ;;  %v1839_v48 = vpop.f32.mrb[11].mxu1  ;;  %v1110_v5 = vadd.f32 %v2709_v37, %v1092_v42 }
 0x62e   :  { %v1103_v51 = vadd.f32 %v1023_v47, %v953_v46 }
 0x62f   :  { %v1488_v49 = vmul.f32 -1.442695, %v1096_v45  ;;  %v1292_v45 = vld [vmem:[#allocation3 + $0xb8] sm:$0xff] }
 0x630   :  { %v1489_v54 = vmul.f32 -1.442695, %v1103_v51 }
 0x631   :  { %2418 = vpow2.f32 %v1488_v49 }
 0x632   :  { %2420 = vpow2.f32 %v1489_v54 }
 0x63b   :  { %v2419_v55 = vpop.eup %2418 }
 0x63c   :  { %v1100_v56 = vadd.f32 1.0, %v2419_v55  ;;  %v2421_v57 = vpop.eup %2420 }
 0x63d   :  { %v1107_v58 = vadd.f32 1.0, %v2421_v57 }
 0x63e   :  { %2422 = vrcp.f32 %v1100_v56 }
 0x63f   :  { %2424 = vrcp.f32 %v1107_v58 }
 0x648   :  { %v2423_v60 = vpop.eup %2422 }
 0x649   :  { %v1111_v2 = vmul.f32 %v2423_v60, %v1110_v5  ;;  %v2425_v7 = vpop.eup %2424 }
 0x64a   :  { %v1114_v8 = vsub.f32 1.0, %v2425_v7  ;;  %v1116_v14 = vmul.f32 %v2425_v7, %v2881_v38 }
 0x64b   :  { %v1112_v3 = vadd.f32 %v1111_v2, %v954_v63 }
 0x64d   :  { %2426 = vtanh.f32 %v1112_v3 }
 0x657   :  { %v2427_v11 = vpop.eup %2426 }
 0x658   :  { %v1115_v13 = vmul.f32 %v2427_v11, %v1114_v8 }
 0x65a   :  { %v2923_v18 = vadd.f32 %v1116_v14, %v1115_v13 }
 0x65c   :  { %1119 = vst [vmem:[#allocation8 + $0x28] sm:$0xff] %v2923_v18  ;;  %1189 = vmatmul.mubr.f32.vlgmr.msra.gmra.mrb[12].mxu0 %v2923_v18  ;;  %1873 = vmatmul.mubr.f32.vlgmr.msra.gmra.mrb[12].mxu1 %v2923_v18 }
 0x65d   :  { %2305 = vmatpush1.bf16.msra.mxu0 %v2585_v9  ;;  %2336 = vmatpush3.bf16.msra.mxu1 %v2602_v29 }
 0x65e   :  { %2307 = vmatprep.subr.bf16.mxu0 %v2587_v10  ;;  %2337 = vmatprep.subr.bf16.mxu1 %v2524_v0 }
 0x65f   :  { %1357 = vmatprep.mubr.f32.mxu0 %v2525_v1  ;;  %1907 = vmatprep.mubr.msk.f32.mxu1 %vm2526_vm0, %v2525_v1  ;;  %v1121_v1 = vld [vmem:[#allocation3 + $0x90] sm:$0xff] }
 0x661   :  { %2309 = vmatpush1.bf16.msra.mxu0 %v2591_v15  ;;  %2339 = vmatpush3.bf16.msra.mxu1 %v2608_v34 }
 0x662   :  { %2311 = vmatprep.subr.bf16.mxu0 %v2594_v16  ;;  %2340 = vmatprep.subr.bf16.mxu1 %v2524_v0  ;;  %v1122_v16 = vld [vmem:[#allocation3 + $0x98] sm:$0xff] }
 0x665   :  { %2313 = vmatpush1.bf16.msra.mxu0 %v2597_v21  ;;  %2342 = vmatpush3.bf16.msra.mxu1 %v2618_v43 }
 0x666   :  { %2315 = vmatprep.subr.bf16.mxu0 %v2600_v23  ;;  %2343 = vmatprep.subr.bf16.mxu1 %v2524_v0 }
 0x669   :  { %2317 = vmatpush1.bf16.msra.mxu0 %v2605_v32  ;;  %2345 = vmatpush3.bf16.msra.mxu1 %v2628_v52  ;;  %v1123_v52 = vld [vmem:[#allocation3 + $0xa0] sm:$0xff] }
 0x66a   :  { %2319 = vmatprep.subr.bf16.mxu0 %v2611_v35  ;;  %2346 = vmatprep.subr.bf16.mxu1 %v2524_v0 }
 0x66d   :  { %2321 = vmatpush1.bf16.msra.mxu0 %v2615_v41  ;;  %2348 = vmatpush3.bf16.msra.mxu1 %v2638_v61 }
 0x66e   :  { %2323 = vmatprep.subr.bf16.mxu0 %v2621_v44  ;;  %2349 = vmatprep.subr.bf16.mxu1 %v2524_v0 }
 0x671   :  { %2325 = vmatpush1.bf16.msra.mxu0 %v2625_v50  ;;  %2351 = vmatpush3.bf16.msra.mxu1 %v2648_v6 }
 0x672   :  { %2327 = vmatprep.subr.bf16.mxu0 %v2631_v53  ;;  %2352 = vmatprep.subr.bf16.mxu1 %v2524_v0 }
 0x675   :  { %2329 = vmatpush1.bf16.msra.mxu0 %v2635_v59  ;;  %2354 = vmatpush3.bf16.msra.mxu1 %v2659_v12 }
 0x676   :  { %2331 = vmatprep.subr.bf16.mxu0 %v2641_v62  ;;  %2355 = vmatprep.subr.bf16.mxu1 %v2524_v0 }
 0x679   :  { %2333 = vmatpush1.bf16.msra.mxu0 %v2645_v4  ;;  %2357 = vmatpush3.bf16.msra.mxu1 %v2665_v17 }
 0x72f   :  { %v1190_v9 = vpop.f32.mrb[12].mxu0  ;;  %v1261_v10 = vpop.f32.mrb[12].mxu1 }
 0x730   :  { %v1265_v15 = vadd.f32 %v1190_v9, %v1121_v1  ;;  %v1192_v21 = vpop.f32.mrb[13].mxu0  ;;  %v1874_v23 = vpop.f32.mrb[13].mxu1  ;;  %v1279_v44 = vadd.f32 %v2709_v37, %v1261_v10 }
 0x731   :  { %v1272_v32 = vadd.f32 %v1192_v21, %v1122_v16 }
 0x732   :  { %v1490_v29 = vmul.f32 -1.442695, %v1265_v15 }
 0x733   :  { %v1491_v34 = vmul.f32 -1.442695, %v1272_v32 }
 0x734   :  { %2428 = vpow2.f32 %v1490_v29 }
 0x735   :  { %2430 = vpow2.f32 %v1491_v34 }
 0x73e   :  { %v2429_v35 = vpop.eup %2428 }
 0x73f   :  { %v1269_v41 = vadd.f32 1.0, %v2429_v35  ;;  %v2431_v0 = vpop.eup %2430 }
 0x740   :  { %v1276_v43 = vadd.f32 1.0, %v2431_v0 }
 0x741   :  { %2432 = vrcp.f32 %v1269_v41 }
 0x742   :  { %2434 = vrcp.f32 %v1276_v43 }
 0x74b   :  { %v2433_v50 = vpop.eup %2432 }
 0x74c   :  { %v1280_v53 = vmul.f32 %v2433_v50, %v1279_v44  ;;  %v2435_v61 = vpop.eup %2434 }
 0x74d   :  { %v1283_v62 = vsub.f32 1.0, %v2435_v61  ;;  %v1285_v12 = vmul.f32 %v2435_v61, %v2923_v18 }
 0x74e   :  { %v1281_v59 = vadd.f32 %v1280_v53, %v1123_v52 }
 0x750   :  { %2436 = vtanh.f32 %v1281_v59 }
 0x75a   :  { %v2437_v4 = vpop.eup %2436 }
 0x75b   :  { %v1284_v6 = vmul.f32 %v2437_v4, %v1283_v62 }
 0x75d   :  { %v1286_v17 = vadd.f32 %v1285_v12, %v1284_v6 }
 0x75f   :  { %1288 = vst [vmem:[#allocation8 + $0x30] sm:$0xff] %v1286_v17  ;;  %1358 = vmatmul.mubr.f32.vlgmr.msra.gmra.mrb[14].mxu0 %v1286_v17  ;;  %1908 = vmatmul.mubr.f32.vlgmr.msra.gmra.mrb[14].mxu1 %v1286_v17 }
 0x832   :  { %v1359_v20 = vpop.f32.mrb[14].mxu0  ;;  %v1430_v22 = vpop.f32.mrb[14].mxu1 }
 0x833   :  { %v1434_v24 = vadd.f32 %v1359_v20, %v1290_v19  ;;  %v1361_v26 = vpop.f32.mrb[15].mxu0  ;;  %v1909_v27 = vpop.f32.mrb[15].mxu1  ;;  %v1448_v40 = vadd.f32 %v2709_v37, %v1430_v22 }
 0x834   :  { %v1441_v30 = vadd.f32 %v1361_v26, %v1291_v25 }
 0x835   :  { %v1492_v28 = vmul.f32 -1.442695, %v1434_v24 }
 0x836   :  { %v1493_v31 = vmul.f32 -1.442695, %v1441_v30 }
 0x837   :  { %2438 = vpow2.f32 %v1492_v28 }
 0x838   :  { %2440 = vpow2.f32 %v1493_v31 }
 0x841   :  { %v2439_v33 = vpop.eup %2438 }
 0x842   :  { %v1438_v36 = vadd.f32 1.0, %v2439_v33  ;;  %v2441_v38 = vpop.eup %2440 }
 0x843   :  { %v1445_v39 = vadd.f32 1.0, %v2441_v38 }
 0x844   :  { %2442 = vrcp.f32 %v1438_v36 }
 0x845   :  { %2444 = vrcp.f32 %v1445_v39 }
 0x84e   :  { %v2443_v42 = vpop.eup %2442 }
 0x84f   :  { %v1449_v46 = vmul.f32 %v2443_v42, %v1448_v40  ;;  %v2445_v48 = vpop.eup %2444 }
 0x850   :  { %v1452_v49 = vsub.f32 1.0, %v2445_v48  ;;  %v1454_v55 = vmul.f32 %v2445_v48, %v1286_v17 }
 0x851   :  { %v1450_v47 = vadd.f32 %v1449_v46, %v1292_v45 }
 0x853   :  { %2446 = vtanh.f32 %v1450_v47 }
 0x85d   :  { %v2447_v51 = vpop.eup %2446 }
 0x85e   :  { %v1453_v54 = vmul.f32 %v2447_v51, %v1452_v49 }
 0x860   :  { %v1455_v56 = vadd.f32 %v1454_v55, %v1453_v54 }
 0x862   :  { %1457 = vst [vmem:[#allocation8 + $0x38] sm:$0xff] %v1455_v56 }
 0x863   :  { %2503 = shalt.err (!%p2500_p6)
}
 0x864   :  { %s2504_s20 = scalar_lea.hbm %s2980_s4, 1024 }
 0x865   :  { %p2505_p7 = scmp.ne.s32.totalorder %s2980_s4, %s2504_s20  ;;  %p2508_p8 = scmp.lt.u32.totalorder %s2504_s20, %s2980_s4 }
 0x867   :  { %p2510_p9 = pnand %p2508_p8, %p2505_p7 }
 0x869   :  { %2513 = shalt.err (!%p2510_p9)
}
 0x86a   :  { %s2528_s25 = smov 128   ;;  %s2529_s26 = smov 8  }
 0x86b   :  { %1470 = dma.vmem_to_hbm [thread:$0]  %s1465_s16, 1024, %s2980_s4, [#allocation5], %s2528_s25, %s2528_s25, %s2529_s26  }
 0x86c   :  { %2518 = dma.done.wait [#allocation5], 1024  }
 0x86d   :  { %2519 = vsyncadd [#allocation5], 4294966272 }
 0x86e   :  { %1474 = vsyncpa [#allocation4], 1 }
 0x86f   :  { %1475 = vsyncpa [#allocation7], 1 }
 0x870   :  { %1476 = vsyncpa [#allocation5], 1 }

</bundles_post_ra>
